<compile_context>
chip_gen: v7x
topology: tpu7x:2x2x1
jax: 0.10.0
libtpu: 0.0.40
codegen_flags: <defaults>
</compile_context>

<pallas_src>
from functools import partial

import numpy as np

import jax
import jax.numpy as jnp
from jax.experimental import pallas as pl
from jax.experimental.pallas import tpu as pltpu

EPS = 1e-5  # PyTorch BatchNorm2d default eps


def _full_spec(shape):
    nd = len(shape)
    return pl.BlockSpec(tuple(shape), lambda i, _nd=nd: (0,) * _nd)


# ----------------------------------------------------------------------------
# In-kernel BatchNorm (training mode): two-pass biased batch statistics.
# `acc` is (N, R, L) with L = W*C lanes; `group_mat` (L, L) sums lanes that
# belong to the same channel; gamma/beta/bias come in already lane-expanded.
# ----------------------------------------------------------------------------
def _bn_lane(acc, gamma_l, beta_l, group_mat, cnt):
    inv_cnt = 1.0 / float(cnt)
    s1 = jnp.sum(jnp.sum(acc, axis=0), axis=0, keepdims=True)          # (1, L)
    mean_l = jnp.dot(s1, group_mat) * inv_cnt                          # (1, L)
    xc = acc - mean_l                                                  # two-pass
    s2 = jnp.sum(jnp.sum(xc * xc, axis=0), axis=0, keepdims=True)      # (1, L)
    var_l = jnp.dot(s2, group_mat) * inv_cnt                           # (1, L)
    return xc * (gamma_l * jax.lax.rsqrt(var_l + EPS)) + beta_l


# ----------------------------------------------------------------------------
# Fused kernel: pre_conv + BN + ReLU + MaxPool(3,2) + ResBlock + ResBlock
# ----------------------------------------------------------------------------
def _impala_fused_kernel(x_ref,                     # (N, H, W*Cin)
                         tpre_ref,                  # (3, W*Cin, Wo*Cout)
                         bpre_ref, gpre_ref, bepre_ref,   # (1, Wo*Cout)
                         ppre_ref,                  # (Wo*Cout, Wo*Cout)
                         sh_ref,                    # (3, Hp, Ho)
                         sw_ref,                    # (3, Wo*Cout, Wp*Cout)
                         tres_ref,                  # (12, Wp*Cout, Wp*Cout)
                         bres_ref, gres_ref, beres_ref,   # (4, 1, Wp*Cout)
                         pres_ref,                  # (Wp*Cout, Wp*Cout)
                         o_ref,                     # (N, Hp, Wp*Cout)
                         hpad_ref,                  # scratch (N, Hp+2, Wp*Cout)
                         *, cnt_pre, cnt_res):
    N, H, _ = x_ref.shape
    _, Hp, L2 = o_ref.shape
    Ho = H - 2
    L1 = tpre_ref.shape[-1]

    ppre = ppre_ref[...]
    pres = pres_ref[...]

    # ---- pre_conv (3x3 valid) as 3 row-shifted block-Toeplitz matmuls ----
    acc = jnp.zeros((N, Ho, L1), jnp.float32)
    for dy in range(3):
        wb = jnp.broadcast_to(tpre_ref[dy], (N,) + tuple(tpre_ref.shape[1:]))
        acc = acc + jnp.einsum("nhv,nvu->nhu", x_ref[:, dy:dy + Ho, :], wb,
                               preferred_element_type=jnp.float32)
    acc = acc + bpre_ref[...]                       # conv bias (cancelled by BN, kept for fidelity)
    act = jnp.maximum(
        _bn_lane(acc, gpre_ref[...], bepre_ref[...], ppre, cnt_pre), 0.0)

    # ---- MaxPool2d(kernel=3, stride=2), fully in-register --------------
    # H direction: 3 one-hot row-selection matmuls + elementwise max.
    ph = None
    for d in range(3):
        sel = jnp.broadcast_to(sh_ref[d], (N, Hp, Ho))
        t = jnp.einsum("njh,nhv->njv", sel, act,
                       preferred_element_type=jnp.float32)
        ph = t if d == 0 else jnp.maximum(ph, t)
    # W direction: 3 one-hot lane-selection matmuls + elementwise max.
    pooled = None
    for d in range(3):
        sel = jnp.broadcast_to(sw_ref[d], (N, L1, L2))
        t = jnp.einsum("njv,nvu->nju", ph, sel,
                       preferred_element_type=jnp.float32)
        pooled = t if d == 0 else jnp.maximum(pooled, t)

    # ---- ResBlock x2: conv-bn-relu-conv-bn-(+x)-relu --------------------
    # W padding lives inside the Toeplitz matrices; only the H halo needs a
    # tiny scratch.  Border rows are zeroed ONCE and never rewritten.
    hpad_ref[...] = jnp.zeros(hpad_ref.shape, hpad_ref.dtype)

    def conv_same(ci):
        a = jnp.zeros((N, Hp, L2), jnp.float32)
        for dy in range(3):
            wb = jnp.broadcast_to(tres_ref[3 * ci + dy], (N, L2, L2))
            a = a + jnp.einsum("nhv,nvu->nhu", hpad_ref[:, dy:dy + Hp, :], wb,
                               preferred_element_type=jnp.float32)
        return a + bres_ref[ci]

    xcur = pooled
    for blk in range(2):
        c1, c2 = 2 * blk, 2 * blk + 1
        hpad_ref[:, 1:Hp + 1, :] = xcur
        h = jnp.maximum(
            _bn_lane(conv_same(c1), gres_ref[c1], beres_ref[c1], pres, cnt_res),
            0.0)
        hpad_ref[:, 1:Hp + 1, :] = h
        y = _bn_lane(conv_same(c2), gres_ref[c2], beres_ref[c2], pres, cnt_res) + xcur
        xcur = jnp.maximum(y, 0.0)

    o_ref[...] = xcur.astype(o_ref.dtype)


# ----------------------------------------------------------------------------
# Wrapper: NCHW boundary, lane-dense NHWC-flattened layout inside the kernel.
# ----------------------------------------------------------------------------
def _impala_forward_impl(x_nchw, prep):
    N, Cin, H, W = x_nchw.shape
    Ho, Wo = H - 2, W - 2
    Hp, Wp = (Ho - 3) // 2 + 1, (Wo - 3) // 2 + 1
    L2 = prep["tres"].shape[-1]
    Cout = L2 // Wp

    # NCHW -> NHWC -> (N, H, W*Cin): lane-dense slab for the kernel.
    x = jnp.transpose(x_nchw, (0, 2, 3, 1)).reshape(N, H, W * Cin)

    args = (x, prep["tpre"], prep["bpre"], prep["gpre"], prep["bepre"],
            prep["ppre"], prep["sh"], prep["sw"],
            prep["tres"], prep["bres"], prep["gres"], prep["beres"],
            prep["pres"])

    kernel = partial(_impala_fused_kernel,
                     cnt_pre=float(N * Ho * Wo), cnt_res=float(N * Hp * Wp))

    out = pl.pallas_call(
        kernel,
        grid=(1,),
        in_specs=[_full_spec(a.shape) for a in args],
        out_specs=_full_spec((N, Hp, L2)),
        out_shape=jax.ShapeDtypeStruct((N, Hp, L2), jnp.float32),
        scratch_shapes=[pltpu.VMEM((N, Hp + 2, L2), jnp.float32)],
        compiler_params=pltpu.CompilerParams(
            dimension_semantics=("arbitrary",),
            vmem_limit_bytes=32 * 1024 * 1024),
    )(*args)

    # (N, Hp, Wp*Cout) -> NCHW to match the PyTorch module.
    return jnp.transpose(out.reshape(N, Hp, Wp, Cout), (0, 3, 1, 2))


impala_block_forward = jax.jit(_impala_forward_impl)


# ----------------------------------------------------------------------------
# Parameter preparation (done once, outside the kernel): block-Toeplitz conv
# matrices, lane-expanded BN/bias vectors, channel-grouping and maxpool
# one-hot selection matrices.
# ----------------------------------------------------------------------------
def _toeplitz_weight(w_hwio, w_in, w_out, pad):
    """(3,3,Cin,Cout) HWIO weight -> (3, w_in*Cin, w_out*Cout) per-row Toeplitz."""
    _, _, cin, cout = w_hwio.shape
    t = np.zeros((3, w_in * cin, w_out * cout), np.float32)
    for dy in range(3):
        for dx in range(3):
            for wo in range(w_out):
                wi = wo + dx - pad
                if 0 <= wi < w_in:
                    t[dy, wi * cin:(wi + 1) * cin,
                      wo * cout:(wo + 1) * cout] = w_hwio[dy, dx]
    return t


def _pool_select(out_len, in_len):
    """One-hot (3, out_len, in_len) selectors for MaxPool(kernel=3, stride=2)."""
    s = np.zeros((3, out_len, in_len), np.float32)
    for d in range(3):
        for j in range(out_len):
            s[d, j, 2 * j + d] = 1.0
    return s


def prepare_impala_params(params, H, W):
    pre = params["pre"]
    Cout = pre["w"].shape[3]
    Ho, Wo = H - 2, W - 2
    Hp, Wp = (Ho - 3) // 2 + 1, (Wo - 3) // 2 + 1
    eye_c = np.eye(Cout, dtype=np.float32)

    convs = []
    for blk in params["res"]:
        convs.append((blk["w1"], blk["b1"], blk["g1"], blk["be1"]))
        convs.append((blk["w2"], blk["b2"], blk["g2"], blk["be2"]))

    def lane_expand(vec, reps):                      # (C,) -> (1, reps*C)
        return np.tile(np.asarray(vec, np.float32), reps)[None, :]

    return {
        "tpre": jnp.asarray(_toeplitz_weight(np.asarray(pre["w"]), W, Wo, pad=0)),
        "bpre": jnp.asarray(lane_expand(pre["b"], Wo)),
        "gpre": jnp.asarray(lane_expand(pre["g"], Wo)),
        "bepre": jnp.asarray(lane_expand(pre["be"], Wo)),
        "ppre": jnp.asarray(np.kron(np.ones((Wo, Wo), np.float32), eye_c)),
        "sh": jnp.asarray(_pool_select(Hp, Ho)),
        "sw": jnp.asarray(np.stack(
            [np.kron(s.T, eye_c) for s in _pool_select(Wp, Wo)])),
        "tres": jnp.asarray(np.concatenate(
            [_toeplitz_weight(np.asarray(w), Wp, Wp, pad=1)
             for w, _, _, _ in convs])),
        "bres": jnp.asarray(np.stack([lane_expand(b, Wp) for _, b, _, _ in convs])),
        "gres": jnp.asarray(np.stack([lane_expand(g, Wp) for _, _, g, _ in convs])),
        "beres": jnp.asarray(np.stack([lane_expand(be, Wp) for _, _, _, be in convs])),
        "pres": jnp.asarray(np.kron(np.ones((Wp, Wp), np.float32), eye_c)),
    }


# ----------------------------------------------------------------------------
# Deterministic synthetic parameter init (shapes from the module __init__).
# Conv weights are HWIO (== torch weight.permute(2, 3, 1, 0)).
# ----------------------------------------------------------------------------
def _init_conv(key, cin, cout):
    kw, kb = jax.random.split(key)
    w = jax.random.normal(kw, (3, 3, cin, cout), jnp.float32) / jnp.sqrt(9.0 * cin)
    b = 0.05 * jax.random.normal(kb, (cout,), jnp.float32)
    return w, b


def _init_bn(key, c):
    kg, kb = jax.random.split(key)
    return (1.0 + 0.1 * jax.random.normal(kg, (c,), jnp.float32),
            0.1 * jax.random.normal(kb, (c,), jnp.float32))


def init_impala_params(key, cin, cout):
    ks = jax.random.split(key, 10)
    w, b = _init_conv(ks[0], cin, cout)
    g, be = _init_bn(ks[1], cout)
    params = {"pre": {"w": w, "b": b, "g": g, "be": be}, "res": []}
    idx = 2
    for _ in range(2):
        w1, b1 = _init_conv(ks[idx], cout, cout)
        g1, be1 = _init_bn(ks[idx + 1], cout)
        w2, b2 = _init_conv(ks[idx + 2], cout, cout)
        g2, be2 = _init_bn(ks[idx + 3], cout)
        params["res"].append({"w1": w1, "b1": b1, "g1": g1, "be1": be1,
                              "w2": w2, "b2": b2, "g2": g2, "be2": be2})
        idx += 4
    return params


if __name__ == "__main__":
    key = jax.random.PRNGKey(0)
    kx, kp = jax.random.split(key)
    N, Cin, H, W, Cout = 2, 4, 16, 16, 8
    x = jax.random.normal(kx, (N, Cin, H, W), jnp.float32)   # NCHW, like PyTorch

    raw_params = init_impala_params(kp, Cin, Cout)
    prep = prepare_impala_params(raw_params, H, W)

    out = impala_block_forward(x, prep)
    out = jax.block_until_ready(out)

    # pre_conv: 16 -> 14, maxpool(3, stride 2): 14 -> 6, resblocks keep 6x6
    Ho, Wo = H - 2, W - 2
    Hp, Wp = (Ho - 3) // 2 + 1, (Wo - 3) // 2 + 1
    assert out.shape == (N, Cout, Hp, Wp), out.shape
    assert bool(jnp.all(jnp.isfinite(out)))
    print("KERNEL_OK")
</pallas_src>

<mosaic_0001>
module attributes {stable_mosaic.version = 11 : i64} {
  func.func @_impala_fused_kernel(%arg0: i32, %arg1: memref<2x16x64xf32, #tpu.memory_space<vmem>>, %arg2: memref<3x64x112xf32, #tpu.memory_space<vmem>>, %arg3: memref<1x112xf32, #tpu.memory_space<vmem>>, %arg4: memref<1x112xf32, #tpu.memory_space<vmem>>, %arg5: memref<1x112xf32, #tpu.memory_space<vmem>>, %arg6: memref<112x112xf32, #tpu.memory_space<vmem>>, %arg7: memref<3x6x14xf32, #tpu.memory_space<vmem>>, %arg8: memref<3x112x48xf32, #tpu.memory_space<vmem>>, %arg9: memref<12x48x48xf32, #tpu.memory_space<vmem>>, %arg10: memref<4x1x48xf32, #tpu.memory_space<vmem>>, %arg11: memref<4x1x48xf32, #tpu.memory_space<vmem>>, %arg12: memref<4x1x48xf32, #tpu.memory_space<vmem>>, %arg13: memref<48x48xf32, #tpu.memory_space<vmem>>, %arg14: memref<2x6x48xf32, #tpu.memory_space<vmem>>, %arg15: memref<2x8x48xf32, #tpu.memory_space<vmem>>) attributes {dimension_semantics = [#tpu.dimension_semantics<arbitrary>], iteration_bounds = array<i64: 1>, scalar_prefetch = 0 : i64, scratch_operands = 1 : i64, tpu.core_type = #tpu.core_type<tc>, window_params = [{pipeline_mode = #tpu.pipeline_mode<synchronous>, transform_indices = @transform_0, window_bounds = array<i64: 2, 16, 64>}, {pipeline_mode = #tpu.pipeline_mode<synchronous>, transform_indices = @transform_1, window_bounds = array<i64: 3, 64, 112>}, {pipeline_mode = #tpu.pipeline_mode<synchronous>, transform_indices = @transform_2, window_bounds = array<i64: 1, 112>}, {pipeline_mode = #tpu.pipeline_mode<synchronous>, transform_indices = @transform_3, window_bounds = array<i64: 1, 112>}, {pipeline_mode = #tpu.pipeline_mode<synchronous>, transform_indices = @transform_4, window_bounds = array<i64: 1, 112>}, {pipeline_mode = #tpu.pipeline_mode<synchronous>, transform_indices = @transform_5, window_bounds = array<i64: 112, 112>}, {pipeline_mode = #tpu.pipeline_mode<synchronous>, transform_indices = @transform_6, window_bounds = array<i64: 3, 6, 14>}, {pipeline_mode = #tpu.pipeline_mode<synchronous>, transform_indices = @transform_7, window_bounds = array<i64: 3, 112, 48>}, {pipeline_mode = #tpu.pipeline_mode<synchronous>, transform_indices = @transform_8, window_bounds = array<i64: 12, 48, 48>}, {pipeline_mode = #tpu.pipeline_mode<synchronous>, transform_indices = @transform_9, window_bounds = array<i64: 4, 1, 48>}, {pipeline_mode = #tpu.pipeline_mode<synchronous>, transform_indices = @transform_10, window_bounds = array<i64: 4, 1, 48>}, {pipeline_mode = #tpu.pipeline_mode<synchronous>, transform_indices = @transform_11, window_bounds = array<i64: 4, 1, 48>}, {pipeline_mode = #tpu.pipeline_mode<synchronous>, transform_indices = @transform_12, window_bounds = array<i64: 48, 48>}, {pipeline_mode = #tpu.pipeline_mode<synchronous>, transform_indices = @transform_13, window_bounds = array<i64: 2, 6, 48>}]} {
    %c0 = arith.constant 0 : index
    %c0_0 = arith.constant 0 : index
    %0 = vector.load %arg6[%c0, %c0_0] : memref<112x112xf32, #tpu.memory_space<vmem>>, vector<112x112xf32>
    %c0_1 = arith.constant 0 : index
    %c0_2 = arith.constant 0 : index
    %1 = vector.load %arg13[%c0_1, %c0_2] : memref<48x48xf32, #tpu.memory_space<vmem>>, vector<48x48xf32>
    %cst = arith.constant 0.000000e+00 : f32
    %2 = vector.broadcast %cst : f32 to vector<2x14x112xf32>
    %c0_3 = arith.constant 0 : index
    %c0_4 = arith.constant 0 : index
    %c0_5 = arith.constant 0 : index
    %3 = vector.load %arg2[%c0_3, %c0_4, %c0_5] : memref<3x64x112xf32, #tpu.memory_space<vmem>>, vector<1x64x112xf32>
    %4 = vector.shape_cast %3 : vector<1x64x112xf32> to vector<64x112xf32>
    %5 = vector.shape_cast %4 : vector<64x112xf32> to vector<1x64x112xf32>
    %6 = vector.broadcast %5 : vector<1x64x112xf32> to vector<2x64x112xf32>
    %c0_6 = arith.constant 0 : index
    %c0_7 = arith.constant 0 : index
    %c0_8 = arith.constant 0 : index
    %7 = vector.load %arg1[%c0_6, %c0_7, %c0_8] : memref<2x16x64xf32, #tpu.memory_space<vmem>>, vector<2x14x64xf32>
    "tpu.trace_start"() <{level = 10 : i32, message = "nhv,nvu->nhu"}> : () -> ()
    %cst_9 = arith.constant dense<0.000000e+00> : vector<2x14x112xf32>
    %8 = tpu.matmul %7, %6, %cst_9 {dimension_numbers = #tpu.dot_dimension_numbers<[2], [1], [1], [2], [0, 0, 0, 1, 1, 2], [0], [0]>} : vector<2x14x64xf32>, vector<2x64x112xf32>, vector<2x14x112xf32> -> vector<2x14x112xf32>
    "tpu.trace_stop"() : () -> ()
    %9 = arith.addf %2, %8 : vector<2x14x112xf32>
    %c1 = arith.constant 1 : index
    %c0_10 = arith.constant 0 : index
    %c0_11 = arith.constant 0 : index
    %10 = vector.load %arg2[%c1, %c0_10, %c0_11] : memref<3x64x112xf32, #tpu.memory_space<vmem>>, vector<1x64x112xf32>
    %11 = vector.shape_cast %10 : vector<1x64x112xf32> to vector<64x112xf32>
    %12 = vector.shape_cast %11 : vector<64x112xf32> to vector<1x64x112xf32>
    %13 = vector.broadcast %12 : vector<1x64x112xf32> to vector<2x64x112xf32>
    %c0_12 = arith.constant 0 : index
    %c1_13 = arith.constant 1 : index
    %c0_14 = arith.constant 0 : index
    %14 = vector.load %arg1[%c0_12, %c1_13, %c0_14] : memref<2x16x64xf32, #tpu.memory_space<vmem>>, vector<2x14x64xf32>
    "tpu.trace_start"() <{level = 10 : i32, message = "nhv,nvu->nhu"}> : () -> ()
    %cst_15 = arith.constant dense<0.000000e+00> : vector<2x14x112xf32>
    %15 = tpu.matmul %14, %13, %cst_15 {dimension_numbers = #tpu.dot_dimension_numbers<[2], [1], [1], [2], [0, 0, 0, 1, 1, 2], [0], [0]>} : vector<2x14x64xf32>, vector<2x64x112xf32>, vector<2x14x112xf32> -> vector<2x14x112xf32>
    "tpu.trace_stop"() : () -> ()
    %16 = arith.addf %9, %15 : vector<2x14x112xf32>
    %c2 = arith.constant 2 : index
    %c0_16 = arith.constant 0 : index
    %c0_17 = arith.constant 0 : index
    %17 = vector.load %arg2[%c2, %c0_16, %c0_17] : memref<3x64x112xf32, #tpu.memory_space<vmem>>, vector<1x64x112xf32>
    %18 = vector.shape_cast %17 : vector<1x64x112xf32> to vector<64x112xf32>
    %19 = vector.shape_cast %18 : vector<64x112xf32> to vector<1x64x112xf32>
    %20 = vector.broadcast %19 : vector<1x64x112xf32> to vector<2x64x112xf32>
    %c0_18 = arith.constant 0 : index
    %c2_19 = arith.constant 2 : index
    %c0_20 = arith.constant 0 : index
    %21 = vector.load %arg1[%c0_18, %c2_19, %c0_20] : memref<2x16x64xf32, #tpu.memory_space<vmem>>, vector<2x14x64xf32>
    "tpu.trace_start"() <{level = 10 : i32, message = "nhv,nvu->nhu"}> : () -> ()
    %cst_21 = arith.constant dense<0.000000e+00> : vector<2x14x112xf32>
    %22 = tpu.matmul %21, %20, %cst_21 {dimension_numbers = #tpu.dot_dimension_numbers<[2], [1], [1], [2], [0, 0, 0, 1, 1, 2], [0], [0]>} : vector<2x14x64xf32>, vector<2x64x112xf32>, vector<2x14x112xf32> -> vector<2x14x112xf32>
    "tpu.trace_stop"() : () -> ()
    %23 = arith.addf %16, %22 : vector<2x14x112xf32>
    %c0_22 = arith.constant 0 : index
    %c0_23 = arith.constant 0 : index
    %24 = vector.load %arg3[%c0_22, %c0_23] : memref<1x112xf32, #tpu.memory_space<vmem>>, vector<1x112xf32>
    %25 = vector.shape_cast %24 : vector<1x112xf32> to vector<1x1x112xf32>
    %26 = vector.broadcast %25 : vector<1x1x112xf32> to vector<2x14x112xf32>
    %27 = arith.addf %23, %26 : vector<2x14x112xf32>
    %c0_24 = arith.constant 0 : index
    %c0_25 = arith.constant 0 : index
    %28 = vector.load %arg4[%c0_24, %c0_25] : memref<1x112xf32, #tpu.memory_space<vmem>>, vector<1x112xf32>
    %c0_26 = arith.constant 0 : index
    %c0_27 = arith.constant 0 : index
    %29 = vector.load %arg5[%c0_26, %c0_27] : memref<1x112xf32, #tpu.memory_space<vmem>>, vector<1x112xf32>
    %cst_28 = arith.constant dense<0.000000e+00> : vector<14x112xf32>
    %30 = vector.multi_reduction <add>, %27, %cst_28 [0] : vector<2x14x112xf32> to vector<14x112xf32>
    %cst_29 = arith.constant dense<0.000000e+00> : vector<112xf32>
    %31 = vector.multi_reduction <add>, %30, %cst_29 [0] : vector<14x112xf32> to vector<112xf32>
    %32 = vector.shape_cast %31 : vector<112xf32> to vector<1x112xf32>
    %cst_30 = arith.constant dense<0.000000e+00> : vector<1x112xf32>
    %33 = tpu.matmul %32, %0, %cst_30 {dimension_numbers = #tpu.dot_dimension_numbers<[1], [0], [0], [1], [0, 0, 1, 1], [], []>} : vector<1x112xf32>, vector<112x112xf32>, vector<1x112xf32> -> vector<1x112xf32>
    %cst_31 = arith.constant 0.00255102036 : f32
    %34 = vector.broadcast %cst_31 : f32 to vector<1x112xf32>
    %35 = arith.mulf %33, %34 : vector<1x112xf32>
    %36 = vector.shape_cast %35 : vector<1x112xf32> to vector<1x1x112xf32>
    %37 = vector.broadcast %36 : vector<1x1x112xf32> to vector<2x14x112xf32>
    %38 = arith.subf %27, %37 : vector<2x14x112xf32>
    %39 = arith.mulf %38, %38 : vector<2x14x112xf32>
    %cst_32 = arith.constant dense<0.000000e+00> : vector<14x112xf32>
    %40 = vector.multi_reduction <add>, %39, %cst_32 [0] : vector<2x14x112xf32> to vector<14x112xf32>
    %cst_33 = arith.constant dense<0.000000e+00> : vector<112xf32>
    %41 = vector.multi_reduction <add>, %40, %cst_33 [0] : vector<14x112xf32> to vector<112xf32>
    %42 = vector.shape_cast %41 : vector<112xf32> to vector<1x112xf32>
    %cst_34 = arith.constant dense<0.000000e+00> : vector<1x112xf32>
    %43 = tpu.matmul %42, %0, %cst_34 {dimension_numbers = #tpu.dot_dimension_numbers<[1], [0], [0], [1], [0, 0, 1, 1], [], []>} : vector<1x112xf32>, vector<112x112xf32>, vector<1x112xf32> -> vector<1x112xf32>
    %cst_35 = arith.constant 0.00255102036 : f32
    %44 = vector.broadcast %cst_35 : f32 to vector<1x112xf32>
    %45 = arith.mulf %43, %44 : vector<1x112xf32>
    %cst_36 = arith.constant 9.99999974E-6 : f32
    %46 = vector.broadcast %cst_36 : f32 to vector<1x112xf32>
    %47 = arith.addf %45, %46 : vector<1x112xf32>
    %48 = math.rsqrt %47 : vector<1x112xf32>
    %49 = arith.mulf %28, %48 : vector<1x112xf32>
    %50 = vector.shape_cast %49 : vector<1x112xf32> to vector<1x1x112xf32>
    %51 = vector.broadcast %50 : vector<1x1x112xf32> to vector<2x14x112xf32>
    %52 = arith.mulf %38, %51 : vector<2x14x112xf32>
    %53 = vector.shape_cast %29 : vector<1x112xf32> to vector<1x1x112xf32>
    %54 = vector.broadcast %53 : vector<1x1x112xf32> to vector<2x14x112xf32>
    %55 = arith.addf %52, %54 : vector<2x14x112xf32>
    %cst_37 = arith.constant 0.000000e+00 : f32
    %56 = vector.broadcast %cst_37 : f32 to vector<2x14x112xf32>
    %57 = arith.maximumf %55, %56 : vector<2x14x112xf32>
    %c0_38 = arith.constant 0 : index
    %c0_39 = arith.constant 0 : index
    %c0_40 = arith.constant 0 : index
    %58 = vector.load %arg7[%c0_38, %c0_39, %c0_40] : memref<3x6x14xf32, #tpu.memory_space<vmem>>, vector<1x6x14xf32>
    %59 = vector.shape_cast %58 : vector<1x6x14xf32> to vector<6x14xf32>
    %60 = vector.shape_cast %59 : vector<6x14xf32> to vector<1x6x14xf32>
    %61 = vector.broadcast %60 : vector<1x6x14xf32> to vector<2x6x14xf32>
    "tpu.trace_start"() <{level = 10 : i32, message = "njh,nhv->njv"}> : () -> ()
    %cst_41 = arith.constant dense<0.000000e+00> : vector<2x6x112xf32>
    %62 = tpu.matmul %61, %57, %cst_41 {dimension_numbers = #tpu.dot_dimension_numbers<[2], [1], [1], [2], [0, 0, 0, 1, 1, 2], [0], [0]>} : vector<2x6x14xf32>, vector<2x14x112xf32>, vector<2x6x112xf32> -> vector<2x6x112xf32>
    "tpu.trace_stop"() : () -> ()
    %c1_42 = arith.constant 1 : index
    %c0_43 = arith.constant 0 : index
    %c0_44 = arith.constant 0 : index
    %63 = vector.load %arg7[%c1_42, %c0_43, %c0_44] : memref<3x6x14xf32, #tpu.memory_space<vmem>>, vector<1x6x14xf32>
    %64 = vector.shape_cast %63 : vector<1x6x14xf32> to vector<6x14xf32>
    %65 = vector.shape_cast %64 : vector<6x14xf32> to vector<1x6x14xf32>
    %66 = vector.broadcast %65 : vector<1x6x14xf32> to vector<2x6x14xf32>
    "tpu.trace_start"() <{level = 10 : i32, message = "njh,nhv->njv"}> : () -> ()
    %cst_45 = arith.constant dense<0.000000e+00> : vector<2x6x112xf32>
    %67 = tpu.matmul %66, %57, %cst_45 {dimension_numbers = #tpu.dot_dimension_numbers<[2], [1], [1], [2], [0, 0, 0, 1, 1, 2], [0], [0]>} : vector<2x6x14xf32>, vector<2x14x112xf32>, vector<2x6x112xf32> -> vector<2x6x112xf32>
    "tpu.trace_stop"() : () -> ()
    %68 = arith.maximumf %62, %67 : vector<2x6x112xf32>
    %c2_46 = arith.constant 2 : index
    %c0_47 = arith.constant 0 : index
    %c0_48 = arith.constant 0 : index
    %69 = vector.load %arg7[%c2_46, %c0_47, %c0_48] : memref<3x6x14xf32, #tpu.memory_space<vmem>>, vector<1x6x14xf32>
    %70 = vector.shape_cast %69 : vector<1x6x14xf32> to vector<6x14xf32>
    %71 = vector.shape_cast %70 : vector<6x14xf32> to vector<1x6x14xf32>
    %72 = vector.broadcast %71 : vector<1x6x14xf32> to vector<2x6x14xf32>
    "tpu.trace_start"() <{level = 10 : i32, message = "njh,nhv->njv"}> : () -> ()
    %cst_49 = arith.constant dense<0.000000e+00> : vector<2x6x112xf32>
    %73 = tpu.matmul %72, %57, %cst_49 {dimension_numbers = #tpu.dot_dimension_numbers<[2], [1], [1], [2], [0, 0, 0, 1, 1, 2], [0], [0]>} : vector<2x6x14xf32>, vector<2x14x112xf32>, vector<2x6x112xf32> -> vector<2x6x112xf32>
    "tpu.trace_stop"() : () -> ()
    %74 = arith.maximumf %68, %73 : vector<2x6x112xf32>
    %c0_50 = arith.constant 0 : index
    %c0_51 = arith.constant 0 : index
    %c0_52 = arith.constant 0 : index
    %75 = vector.load %arg8[%c0_50, %c0_51, %c0_52] : memref<3x112x48xf32, #tpu.memory_space<vmem>>, vector<1x112x48xf32>
    %76 = vector.shape_cast %75 : vector<1x112x48xf32> to vector<112x48xf32>
    %77 = vector.shape_cast %76 : vector<112x48xf32> to vector<1x112x48xf32>
    %78 = vector.broadcast %77 : vector<1x112x48xf32> to vector<2x112x48xf32>
    "tpu.trace_start"() <{level = 10 : i32, message = "njv,nvu->nju"}> : () -> ()
    %cst_53 = arith.constant dense<0.000000e+00> : vector<2x6x48xf32>
    %79 = tpu.matmul %74, %78, %cst_53 {dimension_numbers = #tpu.dot_dimension_numbers<[2], [1], [1], [2], [0, 0, 0, 1, 1, 2], [0], [0]>} : vector<2x6x112xf32>, vector<2x112x48xf32>, vector<2x6x48xf32> -> vector<2x6x48xf32>
    "tpu.trace_stop"() : () -> ()
    %c1_54 = arith.constant 1 : index
    %c0_55 = arith.constant 0 : index
    %c0_56 = arith.constant 0 : index
    %80 = vector.load %arg8[%c1_54, %c0_55, %c0_56] : memref<3x112x48xf32, #tpu.memory_space<vmem>>, vector<1x112x48xf32>
    %81 = vector.shape_cast %80 : vector<1x112x48xf32> to vector<112x48xf32>
    %82 = vector.shape_cast %81 : vector<112x48xf32> to vector<1x112x48xf32>
    %83 = vector.broadcast %82 : vector<1x112x48xf32> to vector<2x112x48xf32>
    "tpu.trace_start"() <{level = 10 : i32, message = "njv,nvu->nju"}> : () -> ()
    %cst_57 = arith.constant dense<0.000000e+00> : vector<2x6x48xf32>
    %84 = tpu.matmul %74, %83, %cst_57 {dimension_numbers = #tpu.dot_dimension_numbers<[2], [1], [1], [2], [0, 0, 0, 1, 1, 2], [0], [0]>} : vector<2x6x112xf32>, vector<2x112x48xf32>, vector<2x6x48xf32> -> vector<2x6x48xf32>
    "tpu.trace_stop"() : () -> ()
    %85 = arith.maximumf %79, %84 : vector<2x6x48xf32>
    %c2_58 = arith.constant 2 : index
    %c0_59 = arith.constant 0 : index
    %c0_60 = arith.constant 0 : index
    %86 = vector.load %arg8[%c2_58, %c0_59, %c0_60] : memref<3x112x48xf32, #tpu.memory_space<vmem>>, vector<1x112x48xf32>
    %87 = vector.shape_cast %86 : vector<1x112x48xf32> to vector<112x48xf32>
    %88 = vector.shape_cast %87 : vector<112x48xf32> to vector<1x112x48xf32>
    %89 = vector.broadcast %88 : vector<1x112x48xf32> to vector<2x112x48xf32>
    "tpu.trace_start"() <{level = 10 : i32, message = "njv,nvu->nju"}> : () -> ()
    %cst_61 = arith.constant dense<0.000000e+00> : vector<2x6x48xf32>
    %90 = tpu.matmul %74, %89, %cst_61 {dimension_numbers = #tpu.dot_dimension_numbers<[2], [1], [1], [2], [0, 0, 0, 1, 1, 2], [0], [0]>} : vector<2x6x112xf32>, vector<2x112x48xf32>, vector<2x6x48xf32> -> vector<2x6x48xf32>
    "tpu.trace_stop"() : () -> ()
    %91 = arith.maximumf %85, %90 : vector<2x6x48xf32>
    %cst_62 = arith.constant 0.000000e+00 : f32
    %92 = vector.broadcast %cst_62 : f32 to vector<2x8x48xf32>
    %c0_63 = arith.constant 0 : index
    %c0_64 = arith.constant 0 : index
    %c0_65 = arith.constant 0 : index
    %93 = vector.load %arg15[%c0_63, %c0_64, %c0_65] : memref<2x8x48xf32, #tpu.memory_space<vmem>>, vector<2x8x48xf32>
    tpu.vector_store %arg15[%c0_63, %c0_64, %c0_65], %92 {strides = array<i32>} : memref<2x8x48xf32, #tpu.memory_space<vmem>>, vector<2x8x48xf32>,
    %c0_66 = arith.constant 0 : index
    %c1_67 = arith.constant 1 : index
    %c0_68 = arith.constant 0 : index
    %94 = vector.load %arg15[%c0_66, %c1_67, %c0_68] : memref<2x8x48xf32, #tpu.memory_space<vmem>>, vector<2x6x48xf32>
    tpu.vector_store %arg15[%c0_66, %c1_67, %c0_68], %91 {strides = array<i32>} : memref<2x8x48xf32, #tpu.memory_space<vmem>>, vector<2x6x48xf32>,
    %cst_69 = arith.constant 0.000000e+00 : f32
    %95 = vector.broadcast %cst_69 : f32 to vector<2x6x48xf32>
    %c0_70 = arith.constant 0 : index
    %c0_71 = arith.constant 0 : index
    %c0_72 = arith.constant 0 : index
    %96 = vector.load %arg9[%c0_70, %c0_71, %c0_72] : memref<12x48x48xf32, #tpu.memory_space<vmem>>, vector<1x48x48xf32>
    %97 = vector.shape_cast %96 : vector<1x48x48xf32> to vector<48x48xf32>
    %98 = vector.shape_cast %97 : vector<48x48xf32> to vector<1x48x48xf32>
    %99 = vector.broadcast %98 : vector<1x48x48xf32> to vector<2x48x48xf32>
    %c0_73 = arith.constant 0 : index
    %c0_74 = arith.constant 0 : index
    %c0_75 = arith.constant 0 : index
    %100 = vector.load %arg15[%c0_73, %c0_74, %c0_75] : memref<2x8x48xf32, #tpu.memory_space<vmem>>, vector<2x6x48xf32>
    "tpu.trace_start"() <{level = 10 : i32, message = "nhv,nvu->nhu"}> : () -> ()
    %cst_76 = arith.constant dense<0.000000e+00> : vector<2x6x48xf32>
    %101 = tpu.matmul %100, %99, %cst_76 {dimension_numbers = #tpu.dot_dimension_numbers<[2], [1], [1], [2], [0, 0, 0, 1, 1, 2], [0], [0]>} : vector<2x6x48xf32>, vector<2x48x48xf32>, vector<2x6x48xf32> -> vector<2x6x48xf32>
    "tpu.trace_stop"() : () -> ()
    %102 = arith.addf %95, %101 : vector<2x6x48xf32>
    %c1_77 = arith.constant 1 : index
    %c0_78 = arith.constant 0 : index
    %c0_79 = arith.constant 0 : index
    %103 = vector.load %arg9[%c1_77, %c0_78, %c0_79] : memref<12x48x48xf32, #tpu.memory_space<vmem>>, vector<1x48x48xf32>
    %104 = vector.shape_cast %103 : vector<1x48x48xf32> to vector<48x48xf32>
    %105 = vector.shape_cast %104 : vector<48x48xf32> to vector<1x48x48xf32>
    %106 = vector.broadcast %105 : vector<1x48x48xf32> to vector<2x48x48xf32>
    %c0_80 = arith.constant 0 : index
    %c1_81 = arith.constant 1 : index
    %c0_82 = arith.constant 0 : index
    %107 = vector.load %arg15[%c0_80, %c1_81, %c0_82] : memref<2x8x48xf32, #tpu.memory_space<vmem>>, vector<2x6x48xf32>
    "tpu.trace_start"() <{level = 10 : i32, message = "nhv,nvu->nhu"}> : () -> ()
    %cst_83 = arith.constant dense<0.000000e+00> : vector<2x6x48xf32>
    %108 = tpu.matmul %107, %106, %cst_83 {dimension_numbers = #tpu.dot_dimension_numbers<[2], [1], [1], [2], [0, 0, 0, 1, 1, 2], [0], [0]>} : vector<2x6x48xf32>, vector<2x48x48xf32>, vector<2x6x48xf32> -> vector<2x6x48xf32>
    "tpu.trace_stop"() : () -> ()
    %109 = arith.addf %102, %108 : vector<2x6x48xf32>
    %c2_84 = arith.constant 2 : index
    %c0_85 = arith.constant 0 : index
    %c0_86 = arith.constant 0 : index
    %110 = vector.load %arg9[%c2_84, %c0_85, %c0_86] : memref<12x48x48xf32, #tpu.memory_space<vmem>>, vector<1x48x48xf32>
    %111 = vector.shape_cast %110 : vector<1x48x48xf32> to vector<48x48xf32>
    %112 = vector.shape_cast %111 : vector<48x48xf32> to vector<1x48x48xf32>
    %113 = vector.broadcast %112 : vector<1x48x48xf32> to vector<2x48x48xf32>
    %c0_87 = arith.constant 0 : index
    %c2_88 = arith.constant 2 : index
    %c0_89 = arith.constant 0 : index
    %114 = vector.load %arg15[%c0_87, %c2_88, %c0_89] : memref<2x8x48xf32, #tpu.memory_space<vmem>>, vector<2x6x48xf32>
    "tpu.trace_start"() <{level = 10 : i32, message = "nhv,nvu->nhu"}> : () -> ()
    %cst_90 = arith.constant dense<0.000000e+00> : vector<2x6x48xf32>
    %115 = tpu.matmul %114, %113, %cst_90 {dimension_numbers = #tpu.dot_dimension_numbers<[2], [1], [1], [2], [0, 0, 0, 1, 1, 2], [0], [0]>} : vector<2x6x48xf32>, vector<2x48x48xf32>, vector<2x6x48xf32> -> vector<2x6x48xf32>
    "tpu.trace_stop"() : () -> ()
    %116 = arith.addf %109, %115 : vector<2x6x48xf32>
    %c0_91 = arith.constant 0 : index
    %c0_92 = arith.constant 0 : index
    %c0_93 = arith.constant 0 : index
    %117 = vector.load %arg10[%c0_91, %c0_92, %c0_93] : memref<4x1x48xf32, #tpu.memory_space<vmem>>, vector<1x1x48xf32>
    %118 = vector.shape_cast %117 : vector<1x1x48xf32> to vector<1x48xf32>
    %119 = vector.shape_cast %118 : vector<1x48xf32> to vector<1x1x48xf32>
    %120 = vector.broadcast %119 : vector<1x1x48xf32> to vector<2x6x48xf32>
    %121 = arith.addf %116, %120 : vector<2x6x48xf32>
    %c0_94 = arith.constant 0 : index
    %c0_95 = arith.constant 0 : index
    %c0_96 = arith.constant 0 : index
    %122 = vector.load %arg11[%c0_94, %c0_95, %c0_96] : memref<4x1x48xf32, #tpu.memory_space<vmem>>, vector<1x1x48xf32>
    %123 = vector.shape_cast %122 : vector<1x1x48xf32> to vector<1x48xf32>
    %c0_97 = arith.constant 0 : index
    %c0_98 = arith.constant 0 : index
    %c0_99 = arith.constant 0 : index
    %124 = vector.load %arg12[%c0_97, %c0_98, %c0_99] : memref<4x1x48xf32, #tpu.memory_space<vmem>>, vector<1x1x48xf32>
    %125 = vector.shape_cast %124 : vector<1x1x48xf32> to vector<1x48xf32>
    %cst_100 = arith.constant dense<0.000000e+00> : vector<6x48xf32>
    %126 = vector.multi_reduction <add>, %121, %cst_100 [0] : vector<2x6x48xf32> to vector<6x48xf32>
    %cst_101 = arith.constant dense<0.000000e+00> : vector<48xf32>
    %127 = vector.multi_reduction <add>, %126, %cst_101 [0] : vector<6x48xf32> to vector<48xf32>
    %128 = vector.shape_cast %127 : vector<48xf32> to vector<1x48xf32>
    %cst_102 = arith.constant dense<0.000000e+00> : vector<1x48xf32>
    %129 = tpu.matmul %128, %1, %cst_102 {dimension_numbers = #tpu.dot_dimension_numbers<[1], [0], [0], [1], [0, 0, 1, 1], [], []>} : vector<1x48xf32>, vector<48x48xf32>, vector<1x48xf32> -> vector<1x48xf32>
    %cst_103 = arith.constant 0.013888889 : f32
    %130 = vector.broadcast %cst_103 : f32 to vector<1x48xf32>
    %131 = arith.mulf %129, %130 : vector<1x48xf32>
    %132 = vector.shape_cast %131 : vector<1x48xf32> to vector<1x1x48xf32>
    %133 = vector.broadcast %132 : vector<1x1x48xf32> to vector<2x6x48xf32>
    %134 = arith.subf %121, %133 : vector<2x6x48xf32>
    %135 = arith.mulf %134, %134 : vector<2x6x48xf32>
    %cst_104 = arith.constant dense<0.000000e+00> : vector<6x48xf32>
    %136 = vector.multi_reduction <add>, %135, %cst_104 [0] : vector<2x6x48xf32> to vector<6x48xf32>
    %cst_105 = arith.constant dense<0.000000e+00> : vector<48xf32>
    %137 = vector.multi_reduction <add>, %136, %cst_105 [0] : vector<6x48xf32> to vector<48xf32>
    %138 = vector.shape_cast %137 : vector<48xf32> to vector<1x48xf32>
    %cst_106 = arith.constant dense<0.000000e+00> : vector<1x48xf32>
    %139 = tpu.matmul %138, %1, %cst_106 {dimension_numbers = #tpu.dot_dimension_numbers<[1], [0], [0], [1], [0, 0, 1, 1], [], []>} : vector<1x48xf32>, vector<48x48xf32>, vector<1x48xf32> -> vector<1x48xf32>
    %cst_107 = arith.constant 0.013888889 : f32
    %140 = vector.broadcast %cst_107 : f32 to vector<1x48xf32>
    %141 = arith.mulf %139, %140 : vector<1x48xf32>
    %cst_108 = arith.constant 9.99999974E-6 : f32
    %142 = vector.broadcast %cst_108 : f32 to vector<1x48xf32>
    %143 = arith.addf %141, %142 : vector<1x48xf32>
    %144 = math.rsqrt %143 : vector<1x48xf32>
    %145 = arith.mulf %123, %144 : vector<1x48xf32>
    %146 = vector.shape_cast %145 : vector<1x48xf32> to vector<1x1x48xf32>
    %147 = vector.broadcast %146 : vector<1x1x48xf32> to vector<2x6x48xf32>
    %148 = arith.mulf %134, %147 : vector<2x6x48xf32>
    %149 = vector.shape_cast %125 : vector<1x48xf32> to vector<1x1x48xf32>
    %150 = vector.broadcast %149 : vector<1x1x48xf32> to vector<2x6x48xf32>
    %151 = arith.addf %148, %150 : vector<2x6x48xf32>
    %cst_109 = arith.constant 0.000000e+00 : f32
    %152 = vector.broadcast %cst_109 : f32 to vector<2x6x48xf32>
    %153 = arith.maximumf %151, %152 : vector<2x6x48xf32>
    %c0_110 = arith.constant 0 : index
    %c1_111 = arith.constant 1 : index
    %c0_112 = arith.constant 0 : index
    %154 = vector.load %arg15[%c0_110, %c1_111, %c0_112] : memref<2x8x48xf32, #tpu.memory_space<vmem>>, vector<2x6x48xf32>
    tpu.vector_store %arg15[%c0_110, %c1_111, %c0_112], %153 {strides = array<i32>} : memref<2x8x48xf32, #tpu.memory_space<vmem>>, vector<2x6x48xf32>,
    %cst_113 = arith.constant 0.000000e+00 : f32
    %155 = vector.broadcast %cst_113 : f32 to vector<2x6x48xf32>
    %c3 = arith.constant 3 : index
    %c0_114 = arith.constant 0 : index
    %c0_115 = arith.constant 0 : index
    %156 = vector.load %arg9[%c3, %c0_114, %c0_115] : memref<12x48x48xf32, #tpu.memory_space<vmem>>, vector<1x48x48xf32>
    %157 = vector.shape_cast %156 : vector<1x48x48xf32> to vector<48x48xf32>
    %158 = vector.shape_cast %157 : vector<48x48xf32> to vector<1x48x48xf32>
    %159 = vector.broadcast %158 : vector<1x48x48xf32> to vector<2x48x48xf32>
    %c0_116 = arith.constant 0 : index
    %c0_117 = arith.constant 0 : index
    %c0_118 = arith.constant 0 : index
    %160 = vector.load %arg15[%c0_116, %c0_117, %c0_118] : memref<2x8x48xf32, #tpu.memory_space<vmem>>, vector<2x6x48xf32>
    "tpu.trace_start"() <{level = 10 : i32, message = "nhv,nvu->nhu"}> : () -> ()
    %cst_119 = arith.constant dense<0.000000e+00> : vector<2x6x48xf32>
    %161 = tpu.matmul %160, %159, %cst_119 {dimension_numbers = #tpu.dot_dimension_numbers<[2], [1], [1], [2], [0, 0, 0, 1, 1, 2], [0], [0]>} : vector<2x6x48xf32>, vector<2x48x48xf32>, vector<2x6x48xf32> -> vector<2x6x48xf32>
    "tpu.trace_stop"() : () -> ()
    %162 = arith.addf %155, %161 : vector<2x6x48xf32>
    %c4 = arith.constant 4 : index
    %c0_120 = arith.constant 0 : index
    %c0_121 = arith.constant 0 : index
    %163 = vector.load %arg9[%c4, %c0_120, %c0_121] : memref<12x48x48xf32, #tpu.memory_space<vmem>>, vector<1x48x48xf32>
    %164 = vector.shape_cast %163 : vector<1x48x48xf32> to vector<48x48xf32>
    %165 = vector.shape_cast %164 : vector<48x48xf32> to vector<1x48x48xf32>
    %166 = vector.broadcast %165 : vector<1x48x48xf32> to vector<2x48x48xf32>
    %c0_122 = arith.constant 0 : index
    %c1_123 = arith.constant 1 : index
    %c0_124 = arith.constant 0 : index
    %167 = vector.load %arg15[%c0_122, %c1_123, %c0_124] : memref<2x8x48xf32, #tpu.memory_space<vmem>>, vector<2x6x48xf32>
    "tpu.trace_start"() <{level = 10 : i32, message = "nhv,nvu->nhu"}> : () -> ()
    %cst_125 = arith.constant dense<0.000000e+00> : vector<2x6x48xf32>
    %168 = tpu.matmul %167, %166, %cst_125 {dimension_numbers = #tpu.dot_dimension_numbers<[2], [1], [1], [2], [0, 0, 0, 1, 1, 2], [0], [0]>} : vector<2x6x48xf32>, vector<2x48x48xf32>, vector<2x6x48xf32> -> vector<2x6x48xf32>
    "tpu.trace_stop"() : () -> ()
    %169 = arith.addf %162, %168 : vector<2x6x48xf32>
    %c5 = arith.constant 5 : index
    %c0_126 = arith.constant 0 : index
    %c0_127 = arith.constant 0 : index
    %170 = vector.load %arg9[%c5, %c0_126, %c0_127] : memref<12x48x48xf32, #tpu.memory_space<vmem>>, vector<1x48x48xf32>
    %171 = vector.shape_cast %170 : vector<1x48x48xf32> to vector<48x48xf32>
    %172 = vector.shape_cast %171 : vector<48x48xf32> to vector<1x48x48xf32>
    %173 = vector.broadcast %172 : vector<1x48x48xf32> to vector<2x48x48xf32>
    %c0_128 = arith.constant 0 : index
    %c2_129 = arith.constant 2 : index
    %c0_130 = arith.constant 0 : index
    %174 = vector.load %arg15[%c0_128, %c2_129, %c0_130] : memref<2x8x48xf32, #tpu.memory_space<vmem>>, vector<2x6x48xf32>
    "tpu.trace_start"() <{level = 10 : i32, message = "nhv,nvu->nhu"}> : () -> ()
    %cst_131 = arith.constant dense<0.000000e+00> : vector<2x6x48xf32>
    %175 = tpu.matmul %174, %173, %cst_131 {dimension_numbers = #tpu.dot_dimension_numbers<[2], [1], [1], [2], [0, 0, 0, 1, 1, 2], [0], [0]>} : vector<2x6x48xf32>, vector<2x48x48xf32>, vector<2x6x48xf32> -> vector<2x6x48xf32>
    "tpu.trace_stop"() : () -> ()
    %176 = arith.addf %169, %175 : vector<2x6x48xf32>
    %c1_132 = arith.constant 1 : index
    %c0_133 = arith.constant 0 : index
    %c0_134 = arith.constant 0 : index
    %177 = vector.load %arg10[%c1_132, %c0_133, %c0_134] : memref<4x1x48xf32, #tpu.memory_space<vmem>>, vector<1x1x48xf32>
    %178 = vector.shape_cast %177 : vector<1x1x48xf32> to vector<1x48xf32>
    %179 = vector.shape_cast %178 : vector<1x48xf32> to vector<1x1x48xf32>
    %180 = vector.broadcast %179 : vector<1x1x48xf32> to vector<2x6x48xf32>
    %181 = arith.addf %176, %180 : vector<2x6x48xf32>
    %c1_135 = arith.constant 1 : index
    %c0_136 = arith.constant 0 : index
    %c0_137 = arith.constant 0 : index
    %182 = vector.load %arg11[%c1_135, %c0_136, %c0_137] : memref<4x1x48xf32, #tpu.memory_space<vmem>>, vector<1x1x48xf32>
    %183 = vector.shape_cast %182 : vector<1x1x48xf32> to vector<1x48xf32>
    %c1_138 = arith.constant 1 : index
    %c0_139 = arith.constant 0 : index
    %c0_140 = arith.constant 0 : index
    %184 = vector.load %arg12[%c1_138, %c0_139, %c0_140] : memref<4x1x48xf32, #tpu.memory_space<vmem>>, vector<1x1x48xf32>
    %185 = vector.shape_cast %184 : vector<1x1x48xf32> to vector<1x48xf32>
    %cst_141 = arith.constant dense<0.000000e+00> : vector<6x48xf32>
    %186 = vector.multi_reduction <add>, %181, %cst_141 [0] : vector<2x6x48xf32> to vector<6x48xf32>
    %cst_142 = arith.constant dense<0.000000e+00> : vector<48xf32>
    %187 = vector.multi_reduction <add>, %186, %cst_142 [0] : vector<6x48xf32> to vector<48xf32>
    %188 = vector.shape_cast %187 : vector<48xf32> to vector<1x48xf32>
    %cst_143 = arith.constant dense<0.000000e+00> : vector<1x48xf32>
    %189 = tpu.matmul %188, %1, %cst_143 {dimension_numbers = #tpu.dot_dimension_numbers<[1], [0], [0], [1], [0, 0, 1, 1], [], []>} : vector<1x48xf32>, vector<48x48xf32>, vector<1x48xf32> -> vector<1x48xf32>
    %cst_144 = arith.constant 0.013888889 : f32
    %190 = vector.broadcast %cst_144 : f32 to vector<1x48xf32>
    %191 = arith.mulf %189, %190 : vector<1x48xf32>
    %192 = vector.shape_cast %191 : vector<1x48xf32> to vector<1x1x48xf32>
    %193 = vector.broadcast %192 : vector<1x1x48xf32> to vector<2x6x48xf32>
    %194 = arith.subf %181, %193 : vector<2x6x48xf32>
    %195 = arith.mulf %194, %194 : vector<2x6x48xf32>
    %cst_145 = arith.constant dense<0.000000e+00> : vector<6x48xf32>
    %196 = vector.multi_reduction <add>, %195, %cst_145 [0] : vector<2x6x48xf32> to vector<6x48xf32>
    %cst_146 = arith.constant dense<0.000000e+00> : vector<48xf32>
    %197 = vector.multi_reduction <add>, %196, %cst_146 [0] : vector<6x48xf32> to vector<48xf32>
    %198 = vector.shape_cast %197 : vector<48xf32> to vector<1x48xf32>
    %cst_147 = arith.constant dense<0.000000e+00> : vector<1x48xf32>
    %199 = tpu.matmul %198, %1, %cst_147 {dimension_numbers = #tpu.dot_dimension_numbers<[1], [0], [0], [1], [0, 0, 1, 1], [], []>} : vector<1x48xf32>, vector<48x48xf32>, vector<1x48xf32> -> vector<1x48xf32>
    %cst_148 = arith.constant 0.013888889 : f32
    %200 = vector.broadcast %cst_148 : f32 to vector<1x48xf32>
    %201 = arith.mulf %199, %200 : vector<1x48xf32>
    %cst_149 = arith.constant 9.99999974E-6 : f32
    %202 = vector.broadcast %cst_149 : f32 to vector<1x48xf32>
    %203 = arith.addf %201, %202 : vector<1x48xf32>
    %204 = math.rsqrt %203 : vector<1x48xf32>
    %205 = arith.mulf %183, %204 : vector<1x48xf32>
    %206 = vector.shape_cast %205 : vector<1x48xf32> to vector<1x1x48xf32>
    %207 = vector.broadcast %206 : vector<1x1x48xf32> to vector<2x6x48xf32>
    %208 = arith.mulf %194, %207 : vector<2x6x48xf32>
    %209 = vector.shape_cast %185 : vector<1x48xf32> to vector<1x1x48xf32>
    %210 = vector.broadcast %209 : vector<1x1x48xf32> to vector<2x6x48xf32>
    %211 = arith.addf %208, %210 : vector<2x6x48xf32>
    %212 = arith.addf %211, %91 : vector<2x6x48xf32>
    %cst_150 = arith.constant 0.000000e+00 : f32
    %213 = vector.broadcast %cst_150 : f32 to vector<2x6x48xf32>
    %214 = arith.maximumf %212, %213 : vector<2x6x48xf32>
    %c0_151 = arith.constant 0 : index
    %c1_152 = arith.constant 1 : index
    %c0_153 = arith.constant 0 : index
    %215 = vector.load %arg15[%c0_151, %c1_152, %c0_153] : memref<2x8x48xf32, #tpu.memory_space<vmem>>, vector<2x6x48xf32>
    tpu.vector_store %arg15[%c0_151, %c1_152, %c0_153], %214 {strides = array<i32>} : memref<2x8x48xf32, #tpu.memory_space<vmem>>, vector<2x6x48xf32>,
    %cst_154 = arith.constant 0.000000e+00 : f32
    %216 = vector.broadcast %cst_154 : f32 to vector<2x6x48xf32>
    %c6 = arith.constant 6 : index
    %c0_155 = arith.constant 0 : index
    %c0_156 = arith.constant 0 : index
    %217 = vector.load %arg9[%c6, %c0_155, %c0_156] : memref<12x48x48xf32, #tpu.memory_space<vmem>>, vector<1x48x48xf32>
    %218 = vector.shape_cast %217 : vector<1x48x48xf32> to vector<48x48xf32>
    %219 = vector.shape_cast %218 : vector<48x48xf32> to vector<1x48x48xf32>
    %220 = vector.broadcast %219 : vector<1x48x48xf32> to vector<2x48x48xf32>
    %c0_157 = arith.constant 0 : index
    %c0_158 = arith.constant 0 : index
    %c0_159 = arith.constant 0 : index
    %221 = vector.load %arg15[%c0_157, %c0_158, %c0_159] : memref<2x8x48xf32, #tpu.memory_space<vmem>>, vector<2x6x48xf32>
    "tpu.trace_start"() <{level = 10 : i32, message = "nhv,nvu->nhu"}> : () -> ()
    %cst_160 = arith.constant dense<0.000000e+00> : vector<2x6x48xf32>
    %222 = tpu.matmul %221, %220, %cst_160 {dimension_numbers = #tpu.dot_dimension_numbers<[2], [1], [1], [2], [0, 0, 0, 1, 1, 2], [0], [0]>} : vector<2x6x48xf32>, vector<2x48x48xf32>, vector<2x6x48xf32> -> vector<2x6x48xf32>
    "tpu.trace_stop"() : () -> ()
    %223 = arith.addf %216, %222 : vector<2x6x48xf32>
    %c7 = arith.constant 7 : index
    %c0_161 = arith.constant 0 : index
    %c0_162 = arith.constant 0 : index
    %224 = vector.load %arg9[%c7, %c0_161, %c0_162] : memref<12x48x48xf32, #tpu.memory_space<vmem>>, vector<1x48x48xf32>
    %225 = vector.shape_cast %224 : vector<1x48x48xf32> to vector<48x48xf32>
    %226 = vector.shape_cast %225 : vector<48x48xf32> to vector<1x48x48xf32>
    %227 = vector.broadcast %226 : vector<1x48x48xf32> to vector<2x48x48xf32>
    %c0_163 = arith.constant 0 : index
    %c1_164 = arith.constant 1 : index
    %c0_165 = arith.constant 0 : index
    %228 = vector.load %arg15[%c0_163, %c1_164, %c0_165] : memref<2x8x48xf32, #tpu.memory_space<vmem>>, vector<2x6x48xf32>
    "tpu.trace_start"() <{level = 10 : i32, message = "nhv,nvu->nhu"}> : () -> ()
    %cst_166 = arith.constant dense<0.000000e+00> : vector<2x6x48xf32>
    %229 = tpu.matmul %228, %227, %cst_166 {dimension_numbers = #tpu.dot_dimension_numbers<[2], [1], [1], [2], [0, 0, 0, 1, 1, 2], [0], [0]>} : vector<2x6x48xf32>, vector<2x48x48xf32>, vector<2x6x48xf32> -> vector<2x6x48xf32>
    "tpu.trace_stop"() : () -> ()
    %230 = arith.addf %223, %229 : vector<2x6x48xf32>
    %c8 = arith.constant 8 : index
    %c0_167 = arith.constant 0 : index
    %c0_168 = arith.constant 0 : index
    %231 = vector.load %arg9[%c8, %c0_167, %c0_168] : memref<12x48x48xf32, #tpu.memory_space<vmem>>, vector<1x48x48xf32>
    %232 = vector.shape_cast %231 : vector<1x48x48xf32> to vector<48x48xf32>
    %233 = vector.shape_cast %232 : vector<48x48xf32> to vector<1x48x48xf32>
    %234 = vector.broadcast %233 : vector<1x48x48xf32> to vector<2x48x48xf32>
    %c0_169 = arith.constant 0 : index
    %c2_170 = arith.constant 2 : index
    %c0_171 = arith.constant 0 : index
    %235 = vector.load %arg15[%c0_169, %c2_170, %c0_171] : memref<2x8x48xf32, #tpu.memory_space<vmem>>, vector<2x6x48xf32>
    "tpu.trace_start"() <{level = 10 : i32, message = "nhv,nvu->nhu"}> : () -> ()
    %cst_172 = arith.constant dense<0.000000e+00> : vector<2x6x48xf32>
    %236 = tpu.matmul %235, %234, %cst_172 {dimension_numbers = #tpu.dot_dimension_numbers<[2], [1], [1], [2], [0, 0, 0, 1, 1, 2], [0], [0]>} : vector<2x6x48xf32>, vector<2x48x48xf32>, vector<2x6x48xf32> -> vector<2x6x48xf32>
    "tpu.trace_stop"() : () -> ()
    %237 = arith.addf %230, %236 : vector<2x6x48xf32>
    %c2_173 = arith.constant 2 : index
    %c0_174 = arith.constant 0 : index
    %c0_175 = arith.constant 0 : index
    %238 = vector.load %arg10[%c2_173, %c0_174, %c0_175] : memref<4x1x48xf32, #tpu.memory_space<vmem>>, vector<1x1x48xf32>
    %239 = vector.shape_cast %238 : vector<1x1x48xf32> to vector<1x48xf32>
    %240 = vector.shape_cast %239 : vector<1x48xf32> to vector<1x1x48xf32>
    %241 = vector.broadcast %240 : vector<1x1x48xf32> to vector<2x6x48xf32>
    %242 = arith.addf %237, %241 : vector<2x6x48xf32>
    %c2_176 = arith.constant 2 : index
    %c0_177 = arith.constant 0 : index
    %c0_178 = arith.constant 0 : index
    %243 = vector.load %arg11[%c2_176, %c0_177, %c0_178] : memref<4x1x48xf32, #tpu.memory_space<vmem>>, vector<1x1x48xf32>
    %244 = vector.shape_cast %243 : vector<1x1x48xf32> to vector<1x48xf32>
    %c2_179 = arith.constant 2 : index
    %c0_180 = arith.constant 0 : index
    %c0_181 = arith.constant 0 : index
    %245 = vector.load %arg12[%c2_179, %c0_180, %c0_181] : memref<4x1x48xf32, #tpu.memory_space<vmem>>, vector<1x1x48xf32>
    %246 = vector.shape_cast %245 : vector<1x1x48xf32> to vector<1x48xf32>
    %cst_182 = arith.constant dense<0.000000e+00> : vector<6x48xf32>
    %247 = vector.multi_reduction <add>, %242, %cst_182 [0] : vector<2x6x48xf32> to vector<6x48xf32>
    %cst_183 = arith.constant dense<0.000000e+00> : vector<48xf32>
    %248 = vector.multi_reduction <add>, %247, %cst_183 [0] : vector<6x48xf32> to vector<48xf32>
    %249 = vector.shape_cast %248 : vector<48xf32> to vector<1x48xf32>
    %cst_184 = arith.constant dense<0.000000e+00> : vector<1x48xf32>
    %250 = tpu.matmul %249, %1, %cst_184 {dimension_numbers = #tpu.dot_dimension_numbers<[1], [0], [0], [1], [0, 0, 1, 1], [], []>} : vector<1x48xf32>, vector<48x48xf32>, vector<1x48xf32> -> vector<1x48xf32>
    %cst_185 = arith.constant 0.013888889 : f32
    %251 = vector.broadcast %cst_185 : f32 to vector<1x48xf32>
    %252 = arith.mulf %250, %251 : vector<1x48xf32>
    %253 = vector.shape_cast %252 : vector<1x48xf32> to vector<1x1x48xf32>
    %254 = vector.broadcast %253 : vector<1x1x48xf32> to vector<2x6x48xf32>
    %255 = arith.subf %242, %254 : vector<2x6x48xf32>
    %256 = arith.mulf %255, %255 : vector<2x6x48xf32>
    %cst_186 = arith.constant dense<0.000000e+00> : vector<6x48xf32>
    %257 = vector.multi_reduction <add>, %256, %cst_186 [0] : vector<2x6x48xf32> to vector<6x48xf32>
    %cst_187 = arith.constant dense<0.000000e+00> : vector<48xf32>
    %258 = vector.multi_reduction <add>, %257, %cst_187 [0] : vector<6x48xf32> to vector<48xf32>
    %259 = vector.shape_cast %258 : vector<48xf32> to vector<1x48xf32>
    %cst_188 = arith.constant dense<0.000000e+00> : vector<1x48xf32>
    %260 = tpu.matmul %259, %1, %cst_188 {dimension_numbers = #tpu.dot_dimension_numbers<[1], [0], [0], [1], [0, 0, 1, 1], [], []>} : vector<1x48xf32>, vector<48x48xf32>, vector<1x48xf32> -> vector<1x48xf32>
    %cst_189 = arith.constant 0.013888889 : f32
    %261 = vector.broadcast %cst_189 : f32 to vector<1x48xf32>
    %262 = arith.mulf %260, %261 : vector<1x48xf32>
    %cst_190 = arith.constant 9.99999974E-6 : f32
    %263 = vector.broadcast %cst_190 : f32 to vector<1x48xf32>
    %264 = arith.addf %262, %263 : vector<1x48xf32>
    %265 = math.rsqrt %264 : vector<1x48xf32>
    %266 = arith.mulf %244, %265 : vector<1x48xf32>
    %267 = vector.shape_cast %266 : vector<1x48xf32> to vector<1x1x48xf32>
    %268 = vector.broadcast %267 : vector<1x1x48xf32> to vector<2x6x48xf32>
    %269 = arith.mulf %255, %268 : vector<2x6x48xf32>
    %270 = vector.shape_cast %246 : vector<1x48xf32> to vector<1x1x48xf32>
    %271 = vector.broadcast %270 : vector<1x1x48xf32> to vector<2x6x48xf32>
    %272 = arith.addf %269, %271 : vector<2x6x48xf32>
    %cst_191 = arith.constant 0.000000e+00 : f32
    %273 = vector.broadcast %cst_191 : f32 to vector<2x6x48xf32>
    %274 = arith.maximumf %272, %273 : vector<2x6x48xf32>
    %c0_192 = arith.constant 0 : index
    %c1_193 = arith.constant 1 : index
    %c0_194 = arith.constant 0 : index
    %275 = vector.load %arg15[%c0_192, %c1_193, %c0_194] : memref<2x8x48xf32, #tpu.memory_space<vmem>>, vector<2x6x48xf32>
    tpu.vector_store %arg15[%c0_192, %c1_193, %c0_194], %274 {strides = array<i32>} : memref<2x8x48xf32, #tpu.memory_space<vmem>>, vector<2x6x48xf32>,
    %cst_195 = arith.constant 0.000000e+00 : f32
    %276 = vector.broadcast %cst_195 : f32 to vector<2x6x48xf32>
    %c9 = arith.constant 9 : index
    %c0_196 = arith.constant 0 : index
    %c0_197 = arith.constant 0 : index
    %277 = vector.load %arg9[%c9, %c0_196, %c0_197] : memref<12x48x48xf32, #tpu.memory_space<vmem>>, vector<1x48x48xf32>
    %278 = vector.shape_cast %277 : vector<1x48x48xf32> to vector<48x48xf32>
    %279 = vector.shape_cast %278 : vector<48x48xf32> to vector<1x48x48xf32>
    %280 = vector.broadcast %279 : vector<1x48x48xf32> to vector<2x48x48xf32>
    %c0_198 = arith.constant 0 : index
    %c0_199 = arith.constant 0 : index
    %c0_200 = arith.constant 0 : index
    %281 = vector.load %arg15[%c0_198, %c0_199, %c0_200] : memref<2x8x48xf32, #tpu.memory_space<vmem>>, vector<2x6x48xf32>
    "tpu.trace_start"() <{level = 10 : i32, message = "nhv,nvu->nhu"}> : () -> ()
    %cst_201 = arith.constant dense<0.000000e+00> : vector<2x6x48xf32>
    %282 = tpu.matmul %281, %280, %cst_201 {dimension_numbers = #tpu.dot_dimension_numbers<[2], [1], [1], [2], [0, 0, 0, 1, 1, 2], [0], [0]>} : vector<2x6x48xf32>, vector<2x48x48xf32>, vector<2x6x48xf32> -> vector<2x6x48xf32>
    "tpu.trace_stop"() : () -> ()
    %283 = arith.addf %276, %282 : vector<2x6x48xf32>
    %c10 = arith.constant 10 : index
    %c0_202 = arith.constant 0 : index
    %c0_203 = arith.constant 0 : index
    %284 = vector.load %arg9[%c10, %c0_202, %c0_203] : memref<12x48x48xf32, #tpu.memory_space<vmem>>, vector<1x48x48xf32>
    %285 = vector.shape_cast %284 : vector<1x48x48xf32> to vector<48x48xf32>
    %286 = vector.shape_cast %285 : vector<48x48xf32> to vector<1x48x48xf32>
    %287 = vector.broadcast %286 : vector<1x48x48xf32> to vector<2x48x48xf32>
    %c0_204 = arith.constant 0 : index
    %c1_205 = arith.constant 1 : index
    %c0_206 = arith.constant 0 : index
    %288 = vector.load %arg15[%c0_204, %c1_205, %c0_206] : memref<2x8x48xf32, #tpu.memory_space<vmem>>, vector<2x6x48xf32>
    "tpu.trace_start"() <{level = 10 : i32, message = "nhv,nvu->nhu"}> : () -> ()
    %cst_207 = arith.constant dense<0.000000e+00> : vector<2x6x48xf32>
    %289 = tpu.matmul %288, %287, %cst_207 {dimension_numbers = #tpu.dot_dimension_numbers<[2], [1], [1], [2], [0, 0, 0, 1, 1, 2], [0], [0]>} : vector<2x6x48xf32>, vector<2x48x48xf32>, vector<2x6x48xf32> -> vector<2x6x48xf32>
    "tpu.trace_stop"() : () -> ()
    %290 = arith.addf %283, %289 : vector<2x6x48xf32>
    %c11 = arith.constant 11 : index
    %c0_208 = arith.constant 0 : index
    %c0_209 = arith.constant 0 : index
    %291 = vector.load %arg9[%c11, %c0_208, %c0_209] : memref<12x48x48xf32, #tpu.memory_space<vmem>>, vector<1x48x48xf32>
    %292 = vector.shape_cast %291 : vector<1x48x48xf32> to vector<48x48xf32>
    %293 = vector.shape_cast %292 : vector<48x48xf32> to vector<1x48x48xf32>
    %294 = vector.broadcast %293 : vector<1x48x48xf32> to vector<2x48x48xf32>
    %c0_210 = arith.constant 0 : index
    %c2_211 = arith.constant 2 : index
    %c0_212 = arith.constant 0 : index
    %295 = vector.load %arg15[%c0_210, %c2_211, %c0_212] : memref<2x8x48xf32, #tpu.memory_space<vmem>>, vector<2x6x48xf32>
    "tpu.trace_start"() <{level = 10 : i32, message = "nhv,nvu->nhu"}> : () -> ()
    %cst_213 = arith.constant dense<0.000000e+00> : vector<2x6x48xf32>
    %296 = tpu.matmul %295, %294, %cst_213 {dimension_numbers = #tpu.dot_dimension_numbers<[2], [1], [1], [2], [0, 0, 0, 1, 1, 2], [0], [0]>} : vector<2x6x48xf32>, vector<2x48x48xf32>, vector<2x6x48xf32> -> vector<2x6x48xf32>
    "tpu.trace_stop"() : () -> ()
    %297 = arith.addf %290, %296 : vector<2x6x48xf32>
    %c3_214 = arith.constant 3 : index
    %c0_215 = arith.constant 0 : index
    %c0_216 = arith.constant 0 : index
    %298 = vector.load %arg10[%c3_214, %c0_215, %c0_216] : memref<4x1x48xf32, #tpu.memory_space<vmem>>, vector<1x1x48xf32>
    %299 = vector.shape_cast %298 : vector<1x1x48xf32> to vector<1x48xf32>
    %300 = vector.shape_cast %299 : vector<1x48xf32> to vector<1x1x48xf32>
    %301 = vector.broadcast %300 : vector<1x1x48xf32> to vector<2x6x48xf32>
    %302 = arith.addf %297, %301 : vector<2x6x48xf32>
    %c3_217 = arith.constant 3 : index
    %c0_218 = arith.constant 0 : index
    %c0_219 = arith.constant 0 : index
    %303 = vector.load %arg11[%c3_217, %c0_218, %c0_219] : memref<4x1x48xf32, #tpu.memory_space<vmem>>, vector<1x1x48xf32>
    %304 = vector.shape_cast %303 : vector<1x1x48xf32> to vector<1x48xf32>
    %c3_220 = arith.constant 3 : index
    %c0_221 = arith.constant 0 : index
    %c0_222 = arith.constant 0 : index
    %305 = vector.load %arg12[%c3_220, %c0_221, %c0_222] : memref<4x1x48xf32, #tpu.memory_space<vmem>>, vector<1x1x48xf32>
    %306 = vector.shape_cast %305 : vector<1x1x48xf32> to vector<1x48xf32>
    %cst_223 = arith.constant dense<0.000000e+00> : vector<6x48xf32>
    %307 = vector.multi_reduction <add>, %302, %cst_223 [0] : vector<2x6x48xf32> to vector<6x48xf32>
    %cst_224 = arith.constant dense<0.000000e+00> : vector<48xf32>
    %308 = vector.multi_reduction <add>, %307, %cst_224 [0] : vector<6x48xf32> to vector<48xf32>
    %309 = vector.shape_cast %308 : vector<48xf32> to vector<1x48xf32>
    %cst_225 = arith.constant dense<0.000000e+00> : vector<1x48xf32>
    %310 = tpu.matmul %309, %1, %cst_225 {dimension_numbers = #tpu.dot_dimension_numbers<[1], [0], [0], [1], [0, 0, 1, 1], [], []>} : vector<1x48xf32>, vector<48x48xf32>, vector<1x48xf32> -> vector<1x48xf32>
    %cst_226 = arith.constant 0.013888889 : f32
    %311 = vector.broadcast %cst_226 : f32 to vector<1x48xf32>
    %312 = arith.mulf %310, %311 : vector<1x48xf32>
    %313 = vector.shape_cast %312 : vector<1x48xf32> to vector<1x1x48xf32>
    %314 = vector.broadcast %313 : vector<1x1x48xf32> to vector<2x6x48xf32>
    %315 = arith.subf %302, %314 : vector<2x6x48xf32>
    %316 = arith.mulf %315, %315 : vector<2x6x48xf32>
    %cst_227 = arith.constant dense<0.000000e+00> : vector<6x48xf32>
    %317 = vector.multi_reduction <add>, %316, %cst_227 [0] : vector<2x6x48xf32> to vector<6x48xf32>
    %cst_228 = arith.constant dense<0.000000e+00> : vector<48xf32>
    %318 = vector.multi_reduction <add>, %317, %cst_228 [0] : vector<6x48xf32> to vector<48xf32>
    %319 = vector.shape_cast %318 : vector<48xf32> to vector<1x48xf32>
    %cst_229 = arith.constant dense<0.000000e+00> : vector<1x48xf32>
    %320 = tpu.matmul %319, %1, %cst_229 {dimension_numbers = #tpu.dot_dimension_numbers<[1], [0], [0], [1], [0, 0, 1, 1], [], []>} : vector<1x48xf32>, vector<48x48xf32>, vector<1x48xf32> -> vector<1x48xf32>
    %cst_230 = arith.constant 0.013888889 : f32
    %321 = vector.broadcast %cst_230 : f32 to vector<1x48xf32>
    %322 = arith.mulf %320, %321 : vector<1x48xf32>
    %cst_231 = arith.constant 9.99999974E-6 : f32
    %323 = vector.broadcast %cst_231 : f32 to vector<1x48xf32>
    %324 = arith.addf %322, %323 : vector<1x48xf32>
    %325 = math.rsqrt %324 : vector<1x48xf32>
    %326 = arith.mulf %304, %325 : vector<1x48xf32>
    %327 = vector.shape_cast %326 : vector<1x48xf32> to vector<1x1x48xf32>
    %328 = vector.broadcast %327 : vector<1x1x48xf32> to vector<2x6x48xf32>
    %329 = arith.mulf %315, %328 : vector<2x6x48xf32>
    %330 = vector.shape_cast %306 : vector<1x48xf32> to vector<1x1x48xf32>
    %331 = vector.broadcast %330 : vector<1x1x48xf32> to vector<2x6x48xf32>
    %332 = arith.addf %329, %331 : vector<2x6x48xf32>
    %333 = arith.addf %332, %214 : vector<2x6x48xf32>
    %cst_232 = arith.constant 0.000000e+00 : f32
    %334 = vector.broadcast %cst_232 : f32 to vector<2x6x48xf32>
    %335 = arith.maximumf %333, %334 : vector<2x6x48xf32>
    %c0_233 = arith.constant 0 : index
    %c0_234 = arith.constant 0 : index
    %c0_235 = arith.constant 0 : index
    %336 = vector.load %arg14[%c0_233, %c0_234, %c0_235] : memref<2x6x48xf32, #tpu.memory_space<vmem>>, vector<2x6x48xf32>
    tpu.vector_store %arg14[%c0_233, %c0_234, %c0_235], %335 {strides = array<i32>} : memref<2x6x48xf32, #tpu.memory_space<vmem>>, vector<2x6x48xf32>,
    return
  }
  func.func @transform_0(%arg0: i32) -> (i32, i32, i32) {
    %c0_i32 = arith.constant 0 : i32
    %c0_i32_0 = arith.constant 0 : i32
    %c0_i32_1 = arith.constant 0 : i32
    %c0_i32_2 = arith.constant 0 : i32
    return %c0_i32, %c0_i32_0, %c0_i32_1 : i32, i32, i32
  }
  func.func @transform_1(%arg0: i32) -> (i32, i32, i32) {
    %c0_i32 = arith.constant 0 : i32
    %c0_i32_0 = arith.constant 0 : i32
    %c0_i32_1 = arith.constant 0 : i32
    %c0_i32_2 = arith.constant 0 : i32
    return %c0_i32, %c0_i32_0, %c0_i32_1 : i32, i32, i32
  }
  func.func @transform_2(%arg0: i32) -> (i32, i32) {
    %c0_i32 = arith.constant 0 : i32
    %c0_i32_0 = arith.constant 0 : i32
    %c0_i32_1 = arith.constant 0 : i32
    return %c0_i32, %c0_i32_0 : i32, i32
  }
  func.func @transform_3(%arg0: i32) -> (i32, i32) {
    %c0_i32 = arith.constant 0 : i32
    %c0_i32_0 = arith.constant 0 : i32
    %c0_i32_1 = arith.constant 0 : i32
    return %c0_i32, %c0_i32_0 : i32, i32
  }
  func.func @transform_4(%arg0: i32) -> (i32, i32) {
    %c0_i32 = arith.constant 0 : i32
    %c0_i32_0 = arith.constant 0 : i32
    %c0_i32_1 = arith.constant 0 : i32
    return %c0_i32, %c0_i32_0 : i32, i32
  }
  func.func @transform_5(%arg0: i32) -> (i32, i32) {
    %c0_i32 = arith.constant 0 : i32
    %c0_i32_0 = arith.constant 0 : i32
    %c0_i32_1 = arith.constant 0 : i32
    return %c0_i32, %c0_i32_0 : i32, i32
  }
  func.func @transform_6(%arg0: i32) -> (i32, i32, i32) {
    %c0_i32 = arith.constant 0 : i32
    %c0_i32_0 = arith.constant 0 : i32
    %c0_i32_1 = arith.constant 0 : i32
    %c0_i32_2 = arith.constant 0 : i32
    return %c0_i32, %c0_i32_0, %c0_i32_1 : i32, i32, i32
  }
  func.func @transform_7(%arg0: i32) -> (i32, i32, i32) {
    %c0_i32 = arith.constant 0 : i32
    %c0_i32_0 = arith.constant 0 : i32
    %c0_i32_1 = arith.constant 0 : i32
    %c0_i32_2 = arith.constant 0 : i32
    return %c0_i32, %c0_i32_0, %c0_i32_1 : i32, i32, i32
  }
  func.func @transform_8(%arg0: i32) -> (i32, i32, i32) {
    %c0_i32 = arith.constant 0 : i32
    %c0_i32_0 = arith.constant 0 : i32
    %c0_i32_1 = arith.constant 0 : i32
    %c0_i32_2 = arith.constant 0 : i32
    return %c0_i32, %c0_i32_0, %c0_i32_1 : i32, i32, i32
  }
  func.func @transform_9(%arg0: i32) -> (i32, i32, i32) {
    %c0_i32 = arith.constant 0 : i32
    %c0_i32_0 = arith.constant 0 : i32
    %c0_i32_1 = arith.constant 0 : i32
    %c0_i32_2 = arith.constant 0 : i32
    return %c0_i32, %c0_i32_0, %c0_i32_1 : i32, i32, i32
  }
  func.func @transform_10(%arg0: i32) -> (i32, i32, i32) {
    %c0_i32 = arith.constant 0 : i32
    %c0_i32_0 = arith.constant 0 : i32
    %c0_i32_1 = arith.constant 0 : i32
    %c0_i32_2 = arith.constant 0 : i32
    return %c0_i32, %c0_i32_0, %c0_i32_1 : i32, i32, i32
  }
  func.func @transform_11(%arg0: i32) -> (i32, i32, i32) {
    %c0_i32 = arith.constant 0 : i32
    %c0_i32_0 = arith.constant 0 : i32
    %c0_i32_1 = arith.constant 0 : i32
    %c0_i32_2 = arith.constant 0 : i32
    return %c0_i32, %c0_i32_0, %c0_i32_1 : i32, i32, i32
  }
  func.func @transform_12(%arg0: i32) -> (i32, i32) {
    %c0_i32 = arith.constant 0 : i32
    %c0_i32_0 = arith.constant 0 : i32
    %c0_i32_1 = arith.constant 0 : i32
    return %c0_i32, %c0_i32_0 : i32, i32
  }
  func.func @transform_13(%arg0: i32) -> (i32, i32, i32) {
    %c0_i32 = arith.constant 0 : i32
    %c0_i32_0 = arith.constant 0 : i32
    %c0_i32_1 = arith.constant 0 : i32
    %c0_i32_2 = arith.constant 0 : i32
    return %c0_i32, %c0_i32_0, %c0_i32_1 : i32, i32, i32
  }
}

</mosaic_0001>

<bundles_post_ra>
// kernel: _impala_forward_impl.1
= control target key start
LH: loop header
LB: loop body
LE: loop exit
PB: predicated region body
PF: predicated region fallthrough
CT: control target
= control target key end

     0   :  { %18 = vsyncpa [#allocation4], 0  ;;  %s6614_s25 = smov [#allocation3]   ;;  %s7712_s0 = inlined_call_operand.vmem [shape: f32[2,16,64], index: 0, kind: input, shape index: {}]   ;;  %s7713_s1 = inlined_call_operand.vmem [shape: f32[3,64,112], index: 1, kind: input, shape index: {}]   ;;  %s7714_s2 = inlined_call_operand.vmem [shape: f32[1,112], index: 2, kind: input, shape index: {}]   ;;  %s7715_s3 = inlined_call_operand.vmem [shape: f32[1,112], index: 3, kind: input, shape index: {}]   ;;  %s7716_s4 = inlined_call_operand.vmem [shape: f32[1,112], index: 4, kind: input, shape index: {}]   ;;  %s7717_s5 = inlined_call_operand.vmem [shape: f32[112,112], index: 5, kind: input, shape index: {}]   ;;  %s7718_s6 = inlined_call_operand.hbm [shape: f32[3,6,14], index: 6, kind: input, shape index: {}]   ;;  %s7719_s7 = inlined_call_operand.vmem [shape: f32[3,112,48], index: 7, kind: input, shape index: {}]   ;;  %s7720_s8 = inlined_call_operand.vmem [shape: f32[12,48,48], index: 8, kind: input, shape index: {}]   ;;  %s7721_s9 = inlined_call_operand.vmem [shape: f32[4,1,48], index: 9, kind: input, shape index: {}]   ;;  %s7722_s10 = inlined_call_operand.vmem [shape: f32[4,1,48], index: 10, kind: input, shape index: {}]   ;;  %s7723_s11 = inlined_call_operand.vmem [shape: f32[4,1,48], index: 11, kind: input, shape index: {}]   ;;  %s7724_s12 = inlined_call_operand.vmem [shape: f32[48,48], index: 12, kind: input, shape index: {}]   ;;  %s7725_s13 = inlined_call_operand.vmem [shape: f32[2,6,48], index: 13, kind: output, shape index: {}]  }
   0x1   :  { %s36_s26 = sshll.u32 %s6614_s25, 4  ;;  %s6590_s29 = scalar_lea.hbm %s7718_s6, 384  ;;  %s37_s26 = int_to_ptr.vmem [resolvable:$true] %s36_s26 }
   0x2   :  { %p6591_p0 = scmp.ne.s32.totalorder %s7718_s6, %s6590_s29  ;;  %p6594_p1 = scmp.lt.u32.totalorder %s6590_s29, %s7718_s6 }
   0x4   :  { %p6596_p2 = pnand %p6594_p1, %p6591_p0 }
   0x6   :  { %6599 = shalt.err (!%p6596_p2)
}
   0x7   :  { %s6600_s17 = scalar_lea.vmem %s37_s26, 384  ;;  %p6605_p4 = scmp.lt.s32.totalorder %s37_s26, %s37_s26 }
   0x8   :  { %p6601_p3 = scmp.ne.s32.totalorder %s37_s26, %s6600_s17  ;;  %p6606_p5 = scmp.lt.s32.totalorder %s6600_s17, %s6600_s17 }
   0xa   :  { %p6607_p6 = por %p6606_p5, %p6605_p4 }
   0xc   :  { %p6608_p7 = pnand %p6607_p6, %p6601_p3 }
   0xe   :  { %6611 = shalt.err (!%p6608_p7)
}
   0xf   :  { %s6615_s18 = smov 128   ;;  %s6616_s19 = smov 8  }
  0x10   :  { %42 = dma.hbm_to_vmem [thread:$0]  %s7718_s6, 384, %s37_s26, [#allocation4], %s6615_s18, %s6615_s18, %s6616_s19  }
  0x11   :  { %6612 = dma.done.wait [#allocation4], 384  }
  0x12   :  { %6613 = vsyncadd [#allocation4], 4294966912  ;;  %v4490_v0 = vld [vmem:[%s7713_s1 + $0x40] sm:$0xff]  ;;  %v4491_v1 = vld [vmem:[%s7713_s1 + $0x48] sm:$0xff]  ;;  %vm103_vm0 = vcmask 523264   ;;  %v6617_v51 = vmov 0.0|0.0  }
  0x13   :  { %v4492_v2 = vld [vmem:[%s7713_s1 + $0x50] sm:$0xff]  ;;  %v5989_v3 = vpack.c.bf16 %v4491_v1, %v4490_v0  ;;  %v4493_v4 = vld [vmem:[%s7713_s1 + $0x58] sm:$0xff]  ;;  %v4494_v6 = vld [vmem:[%s7713_s1 + $0x60] sm:$0xff]  ;;  %vm6618_vm1 = vmmov 0   ;;  %vm624_vm2 = vcmask 914432   ;;  %vm620_vm3 = vcmask 916480  }
  0x14   :  { %v5993_v5 = vpack.c.bf16 %v4493_v4, %v4492_v2  ;;  %v4495_v7 = vld [vmem:[%s7713_s1 + $0x68] sm:$0xff]  ;;  %v101_v9 = vld [vmem:[%s7712_s0 + $0x11] sm:$0xff]  ;;  %v78_v14 = vld [vmem:[%s7713_s1] sm:$0xff]  ;;  %vm844_vm4 = vcmask 1045504   ;;  %vm6620_vm5 = vmmov 1   ;;  %vm840_vm7 = vcmask 113664  }
  0x15   :  { %5990 = vmatprep.subr.bf16.mxu0 %v5989_v3  ;;  %6006 = vmatprep.subr.bf16.mxu1 %v5989_v3  ;;  %v99_v8 = vld [vmem:[%s7712_s0 + $0x1] sm:$0xff]  ;;  %v5997_v10 = vpack.c.bf16 %v4495_v7, %v4494_v6  ;;  %v4496_v11 = vld [vmem:[%s7713_s1 + $0x70] sm:$0xff]  ;;  %v4497_v12 = vld [vmem:[%s7713_s1 + $0x78] sm:$0xff]  ;;  %v6619_v6 = vmov 0.0   ;;  %vm1759_vm8 = vcmask 392192   ;;  %vm1762_vm9 = vcmask 390144  }
  0x16   :  { %5992 = vmatpush3.bf16.msra.mxu0 %v5989_v3  ;;  %6008 = vmatpush3.bf16.msra.mxu1 %v5989_v3  ;;  %v6001_v13 = vpack.c.bf16 %v4497_v12, %v4496_v11  ;;  %v79_v15 = vld [vmem:[%s7713_s1 + $0x8] sm:$0xff]  ;;  %v80_v17 = vld [vmem:[%s7713_s1 + $0x10] sm:$0xff]  ;;  %v81_v18 = vld [vmem:[%s7713_s1 + $0x18] sm:$0xff]  ;;  %1760 = vst.msk [vmem:[#allocation2] sm:$0xff] %vm1759_vm8, %v6619_v6 }
  0x17   :  { %5994 = vmatprep.subr.bf16.mxu0 %v5993_v5  ;;  %6010 = vmatprep.subr.bf16.mxu1 %v5993_v5  ;;  %v6021_v16 = vpack.c.bf16 %v79_v15, %v78_v14  ;;  %v100_v19 = vld [vmem:[%s7712_s0 + $0x9] sm:$0x3f]  ;;  %v102_v20 = vld [vmem:[%s7712_s0 + $0x19] sm:$0x3f]  ;;  %v6025_v21 = vpack.c.bf16 %v81_v18, %v80_v17  ;;  %v82_v22 = vld [vmem:[%s7713_s1 + $0x20] sm:$0xff]  ;;  %1761 = vst.msk [vmem:[#allocation2 + $0x8] sm:$0xff] %vm1759_vm8, %v6619_v6 }
  0x18   :  { %5121 = vmatprep.mubr.msk.f32.mxu0 %vm103_vm0, %v99_v8  ;;  %5140 = vmatprep.mubr.msk.f32.mxu1 %vm103_vm0, %v101_v9  ;;  %v83_v23 = vld [vmem:[%s7713_s1 + $0x28] sm:$0xff]  ;;  %v86_v24 = vld [vmem:[%s7712_s0] sm:$0xff]  ;;  %v88_v25 = vld [vmem:[%s7712_s0 + $0x10] sm:$0xff] }
  0x19   :  { %v6029_v26 = vpack.c.bf16 %v83_v23, %v82_v22  ;;  %v84_v27 = vld [vmem:[%s7713_s1 + $0x30] sm:$0xff]  ;;  %v85_v28 = vld [vmem:[%s7713_s1 + $0x38] sm:$0xff]  ;;  %v4506_v30 = vld [vmem:[%s7713_s1 + $0x80] sm:$0xff] }
  0x1a   :  { %5996 = vmatpush3.bf16.msra.mxu0 %v5993_v5  ;;  %6012 = vmatpush3.bf16.msra.mxu1 %v5993_v5  ;;  %v6033_v29 = vpack.c.bf16 %v85_v28, %v84_v27  ;;  %v4507_v31 = vld [vmem:[%s7713_s1 + $0x88] sm:$0xff]  ;;  %v4508_v33 = vld [vmem:[%s7713_s1 + $0x90] sm:$0xff]  ;;  %v4509_v34 = vld [vmem:[%s7713_s1 + $0x98] sm:$0xff] }
  0x1b   :  { %5998 = vmatprep.subr.bf16.mxu0 %v5997_v10  ;;  %6014 = vmatprep.subr.bf16.mxu1 %v5997_v10  ;;  %v6053_v32 = vpack.c.bf16 %v4507_v31, %v4506_v30  ;;  %v87_v35 = vld [vmem:[%s7712_s0 + $0x8] sm:$0x3f]  ;;  %v89_v36 = vld [vmem:[%s7712_s0 + $0x18] sm:$0x3f]  ;;  %v6057_v37 = vpack.c.bf16 %v4509_v34, %v4508_v33  ;;  %v4510_v38 = vld [vmem:[%s7713_s1 + $0xa0] sm:$0xff]  ;;  %v711_v31 = vlaneseq }
  0x1c   :  { %v4511_v39 = vld [vmem:[%s7713_s1 + $0xa8] sm:$0xff]  ;;  %v439_v41 = vld [vmem:[%s7712_s0 + $0x12] sm:$0xff]  ;;  %v58_v46 = vld [vmem:[%s7717_s5] sm:$0xff] }
  0x1d   :  { %v437_v40 = vld [vmem:[%s7712_s0 + $0x2] sm:$0xff]  ;;  %v6061_v42 = vpack.c.bf16 %v4511_v39, %v4510_v38  ;;  %v4512_v43 = vld [vmem:[%s7713_s1 + $0xb0] sm:$0xff]  ;;  %v4513_v44 = vld [vmem:[%s7713_s1 + $0xb8] sm:$0xff] }
  0x1e   :  { %6000 = vmatpush3.bf16.msra.mxu0 %v5997_v10  ;;  %6016 = vmatpush3.bf16.msra.mxu1 %v5997_v10  ;;  %v6065_v45 = vpack.c.bf16 %v4513_v44, %v4512_v43  ;;  %v59_v47 = vld [vmem:[%s7717_s5 + $0x8] sm:$0xff]  ;;  %v440_v49 = vld [vmem:[%s7712_s0 + $0x1a] sm:$0x3f]  ;;  %v60_v52 = vld [vmem:[%s7717_s5 + $0x10] sm:$0xff] }
  0x1f   :  { %6002 = vmatprep.subr.bf16.mxu0 %v6001_v13  ;;  %6018 = vmatprep.subr.bf16.mxu1 %v6001_v13  ;;  %v438_v48 = vld [vmem:[%s7712_s0 + $0xa] sm:$0x3f]  ;;  %v6086_v50 = vpack.c.bf16 %v59_v47, %v58_v46  ;;  %v61_v53 = vld [vmem:[%s7717_s5 + $0x18] sm:$0xff]  ;;  %v62_v55 = vld [vmem:[%s7717_s5 + $0x20] sm:$0xff] }
  0x20   :  { %v6089_v54 = vpack.c.bf16 %v61_v53, %v60_v52  ;;  %v63_v56 = vld [vmem:[%s7717_s5 + $0x28] sm:$0xff]  ;;  %v64_v58 = vld [vmem:[%s7717_s5 + $0x30] sm:$0xff]  ;;  %v65_v59 = vld [vmem:[%s7717_s5 + $0x38] sm:$0xff] }
  0x21   :  { %v6092_v57 = vpack.c.bf16 %v63_v56, %v62_v55  ;;  %v6095_v60 = vpack.c.bf16 %v65_v59, %v64_v58  ;;  %v66_v61 = vld [vmem:[%s7717_s5 + $0x40] sm:$0xff]  ;;  %v67_v62 = vld [vmem:[%s7717_s5 + $0x48] sm:$0xff]  ;;  %v68_v0 = vld [vmem:[%s7717_s5 + $0x50] sm:$0xff] }
  0x22   :  { %6004 = vmatpush3.bf16.msra.mxu0 %v6001_v13  ;;  %6020 = vmatpush3.bf16.msra.mxu1 %v6001_v13  ;;  %v6098_v63 = vpack.c.bf16 %v67_v62, %v66_v61  ;;  %v69_v1 = vld [vmem:[%s7717_s5 + $0x58] sm:$0xff]  ;;  %v70_v3 = vld [vmem:[%s7717_s5 + $0x60] sm:$0xff]  ;;  %v71_v4 = vld [vmem:[%s7717_s5 + $0x68] sm:$0xff] }
  0x23   :  { %6022 = vmatprep.subr.bf16.mxu0 %v6021_v16  ;;  %6038 = vmatprep.subr.bf16.mxu1 %v6021_v16  ;;  %v6101_v2 = vpack.c.bf16 %v69_v1, %v68_v0  ;;  %v6104_v5 = vpack.c.bf16 %v71_v4, %v70_v3  ;;  %v4518_v7 = vld [vmem:[%s7714_s2] ss:$0 sm:$0xff]  ;;  %vm6916_vm6 = vmpackc.low %vm844_vm4, %vm6620_vm5 }
  0x25   :  { %5122 = vmatmul.mubr.msk.f32.vlgmr.msra.gmra.mrb[0].mxu0 %vm103_vm0, %v100_v19  ;;  %5141 = vmatmul.mubr.msk.f32.vlgmr.msra.gmra.mrb[0].mxu1 %vm103_vm0, %v102_v20 }
  0x26   :  { %6024 = vmatpush3.bf16.msra.mxu0 %v6021_v16  ;;  %6040 = vmatpush3.bf16.msra.mxu1 %v6021_v16 }
  0x27   :  { %6026 = vmatprep.subr.bf16.mxu0 %v6025_v21  ;;  %6042 = vmatprep.subr.bf16.mxu1 %v6025_v21 }
  0x28   :  { %5159 = vmatprep.mubr.msk.f32.mxu0 %vm103_vm0, %v86_v24  ;;  %5178 = vmatprep.mubr.msk.f32.mxu1 %vm103_vm0, %v88_v25 }
  0x2a   :  { %6028 = vmatpush3.bf16.msra.mxu0 %v6025_v21  ;;  %6044 = vmatpush3.bf16.msra.mxu1 %v6025_v21 }
  0x2b   :  { %6030 = vmatprep.subr.bf16.mxu0 %v6029_v26  ;;  %6046 = vmatprep.subr.bf16.mxu1 %v6029_v26 }
  0x2e   :  { %6032 = vmatpush3.bf16.msra.mxu0 %v6029_v26  ;;  %6048 = vmatpush3.bf16.msra.mxu1 %v6029_v26 }
  0x2f   :  { %6034 = vmatprep.subr.bf16.mxu0 %v6033_v29  ;;  %6050 = vmatprep.subr.bf16.mxu1 %v6033_v29 }
  0x32   :  { %6036 = vmatpush3.bf16.msra.mxu0 %v6033_v29  ;;  %6052 = vmatpush3.bf16.msra.mxu1 %v6033_v29 }
  0x33   :  { %6054 = vmatprep.subr.bf16.mxu0 %v6053_v32  ;;  %6070 = vmatprep.subr.bf16.mxu1 %v6053_v32 }
  0x35   :  { %5160 = vmatmul.mubr.msk.f32.vlgmr.msra.gmra.mrb[0].mxu0 %vm103_vm0, %v87_v35  ;;  %5179 = vmatmul.mubr.msk.f32.vlgmr.msra.gmra.mrb[0].mxu1 %vm103_vm0, %v89_v36 }
  0x36   :  { %6056 = vmatpush3.bf16.msra.mxu0 %v6053_v32  ;;  %6072 = vmatpush3.bf16.msra.mxu1 %v6053_v32  ;;  %v712_v32 = vshrl.u32 %v711_v31, 7 }
  0x37   :  { %6058 = vmatprep.subr.bf16.mxu0 %v6057_v37  ;;  %6074 = vmatprep.subr.bf16.mxu1 %v6057_v37 }
  0x38   :  { %5197 = vmatprep.mubr.msk.f32.mxu0 %vm103_vm0, %v437_v40  ;;  %5216 = vmatprep.mubr.msk.f32.mxu1 %vm103_vm0, %v439_v41  ;;  %v6897_v33 = vsub.s32 0, %v712_v32  ;;  %v1289_v32 = vld [vmem:[%s7719_s7 + $0x20] sm:$0xff] }
  0x3a   :  { %6060 = vmatpush3.bf16.msra.mxu0 %v6057_v37  ;;  %6076 = vmatpush3.bf16.msra.mxu1 %v6057_v37 }
  0x3b   :  { %6062 = vmatprep.subr.bf16.mxu0 %v6061_v42  ;;  %6078 = vmatprep.subr.bf16.mxu1 %v6061_v42 }
  0x3e   :  { %6064 = vmatpush3.bf16.msra.mxu0 %v6061_v42  ;;  %6080 = vmatpush3.bf16.msra.mxu1 %v6061_v42 }
  0x3f   :  { %6066 = vmatprep.subr.bf16.mxu0 %v6065_v45  ;;  %6082 = vmatprep.subr.bf16.mxu1 %v6065_v45 }
  0x42   :  { %6068 = vmatpush3.bf16.msra.mxu0 %v6065_v45  ;;  %6084 = vmatpush3.bf16.msra.mxu1 %v6065_v45 }
  0x43   :  { %6085 = vmatprep.subr.bf16.mxu0 %v6617_v51  ;;  %6106 = vmatprep.subr.bf16.mxu1 %v6617_v51 }
  0x45   :  { %5198 = vmatmul.mubr.msk.f32.vlgmr.msra.gmra.mrb[0].mxu0 %vm103_vm0, %v438_v48  ;;  %5217 = vmatmul.mubr.msk.f32.vlgmr.msra.gmra.mrb[0].mxu1 %vm103_vm0, %v440_v49 }
  0x46   :  { %6087 = vmatpush3.bf16.msra.mxu0 %v6086_v50  ;;  %6108 = vmatpush3.bf16.msra.mxu1 %v6086_v50 }
  0x47   :  { %6088 = vmatprep.subr.bf16.mxu0 %v6617_v51  ;;  %6109 = vmatprep.subr.bf16.mxu1 %v6617_v51 }
  0x48   :  { %5247 = vmatprep.mubr.msk.f32.mxu0 %vm6618_vm1, %v6619_v6  ;;  %5278 = vmatprep.mubr.msk.f32.mxu1 %vm6618_vm1, %v6619_v6 }
  0x4a   :  { %6090 = vmatpush3.bf16.msra.mxu0 %v6089_v54  ;;  %6111 = vmatpush3.bf16.msra.mxu1 %v6089_v54 }
  0x4b   :  { %6091 = vmatprep.subr.bf16.mxu0 %v6617_v51  ;;  %6112 = vmatprep.subr.bf16.mxu1 %v6617_v51 }
  0x4e   :  { %6093 = vmatpush3.bf16.msra.mxu0 %v6092_v57  ;;  %6114 = vmatpush3.bf16.msra.mxu1 %v6092_v57 }
  0x4f   :  { %6094 = vmatprep.subr.bf16.mxu0 %v6617_v51  ;;  %6115 = vmatprep.subr.bf16.mxu1 %v6617_v51 }
  0x52   :  { %6096 = vmatpush3.bf16.msra.mxu0 %v6095_v60  ;;  %6117 = vmatpush3.bf16.msra.mxu1 %v6095_v60 }
  0x53   :  { %6097 = vmatprep.subr.bf16.mxu0 %v6617_v51  ;;  %6118 = vmatprep.subr.bf16.mxu1 %v6617_v51 }
  0x56   :  { %6099 = vmatpush3.bf16.msra.mxu0 %v6098_v63  ;;  %6120 = vmatpush3.bf16.msra.mxu1 %v6098_v63 }
  0x57   :  { %6100 = vmatprep.subr.bf16.mxu0 %v6617_v51  ;;  %6121 = vmatprep.subr.bf16.mxu1 %v6617_v51 }
  0x5a   :  { %6102 = vmatpush3.bf16.msra.mxu0 %v6101_v2  ;;  %6123 = vmatpush3.bf16.msra.mxu1 %v6101_v2  ;;  %v618_v2 = vld [vmem:[%s7715_s3] sm:$0x1] }
  0x5b   :  { %6103 = vmatprep.subr.bf16.mxu0 %v6617_v51  ;;  %6124 = vmatprep.subr.bf16.mxu1 %v6617_v51 }
  0x5e   :  { %6105 = vmatpush3.bf16.msra.mxu0 %v6104_v5  ;;  %6126 = vmatpush3.bf16.msra.mxu1 %v6104_v5 }
  0x5f   :  { %6127 = vmatprep.subr.bf16.mxu0 %v6617_v51  ;;  %6131 = vmatprep.subr.bf16.mxu1 %v6617_v51 }
 0x118   :  { %v5199_v8 = vpop.f32.mrb[0].mxu0  ;;  %v5218_v9 = vpop.f32.mrb[0].mxu1 }
 0x119   :  { %v615_v10 = vadd.f32 %v5199_v8, %v4518_v7  ;;  %v617_v11 = vadd.f32 %v5218_v9, %v4518_v7  ;;  %v513_v12 = vpop.f32.mrb[1].mxu0  ;;  %v594_v13 = vpop.f32.mrb[1].mxu1 }
 0x11a   :  { %v614_v14 = vadd.f32 %v4518_v7, %v513_v12  ;;  %v616_v15 = vadd.f32 %v4518_v7, %v594_v13  ;;  %v4521_v7 = vld [vmem:[%s7716_s4] ss:$0 sm:$0xff] }
 0x11b   :  { %v625_v16 = vsel %vm624_vm2, %v615_v10, 0.0  ;;  %v626_v17 = vsel %vm624_vm2, %v617_v11, 0.0 }
 0x11c   :  { %v627_v18 = vadd.f32 %v626_v17, %v625_v16  ;;  %v621_v19 = vsel %vm620_vm3, %v614_v14, 0.0  ;;  %v622_v20 = vsel %vm620_vm3, %v616_v15, 0.0 }
 0x11d   :  { %v623_v21 = vadd.f32 %v622_v20, %v621_v19  ;;  %v4548_v20 = vld [vmem:[%s7719_s7 + $0xd0] sm:$0xff] }
 0x11e   :  { %v629_v22 = vsel %vm624_vm2, %v627_v18, 0.0 }
 0x11f   :  { %v628_v23 = vsel %vm620_vm3, %v623_v21, 0.0 }
 0x120   :  { %v630_v24 = vadd.f32 %v629_v22, %v628_v23  ;;  %v839_v23 = vld [vmem:[#allocation3] sm:$0x3f] }
 0x122   :  { %v631_v25 = vrot.slane %v630_v24, 4 }
 0x124   :  { %v632_v26 = vadd.f32 %v631_v25, %v630_v24  ;;  %v992_v24 = vld [vmem:[#allocation3 + $0x8] sm:$0x3f]  ;;  %v1285_v25 = vld [vmem:[%s7719_s7] sm:$0xff] }
 0x126   :  { %v633_v27 = vrot.slane %v632_v26, 2 }
 0x128   :  { %v634_v28 = vadd.f32 %v633_v27, %v632_v26  ;;  %v1286_v26 = vld [vmem:[%s7719_s7 + $0x8] sm:$0xff]  ;;  %v1139_v27 = vld [vmem:[#allocation3 + $0x10] sm:$0x3f] }
 0x12a   :  { %v635_v29 = vrot.slane %v634_v28, 1 }
 0x12c   :  { %v636_v30 = vadd.f32 %v635_v29, %v634_v28  ;;  %v6152_v28 = vpack.c.bf16 %v1286_v26, %v1285_v25  ;;  %v1287_v29 = vld [vmem:[%s7719_s7 + $0x10] sm:$0xff] }
 0x12d   :  { %v4554_v26 = vld [vmem:[%s7719_s7 + $0xf0] sm:$0xff] }
 0x12e   :  { %5248 = vmatmul.mubr.msk.f32.vlgmr.msra.gmra.mrb[2].mxu0 %vm620_vm3, %v636_v30  ;;  %v1288_v30 = vld [vmem:[%s7719_s7 + $0x18] sm:$0xff] }
 0x12f   :  { %5285 = vmatprep.mubr.msk.f32.mxu0 %vm6618_vm1, %v6619_v6  ;;  %v6155_v31 = vpack.c.bf16 %v1288_v30, %v1287_v29  ;;  %v4556_v29 = vld [vmem:[%s7719_s7 + $0x100] sm:$0xff]  ;;  %v4557_v30 = vld [vmem:[%s7719_s7 + $0x108] sm:$0xff] }
 0x201   :  { %v706_v34 = vpop.f32.mrb[2].mxu0 }
 0x202   :  { %v710_v35 = vmul.f32 0.0025510204, %v706_v34  ;;  %v5249_v36 = vpop.f32.mrb[3].mxu0  ;;  %v1290_v34 = vld [vmem:[%s7719_s7 + $0x28] sm:$0xff] }
 0x203   :  { %v1291_v36 = vld [vmem:[%s7719_s7 + $0x30] sm:$0xff] }
 0x204   :  { %v714_v37 = vrot.slane %v710_v35, %v6897_v33  ;;  %v6158_v35 = vpack.c.bf16 %v1290_v34, %v1289_v32  ;;  %v4558_v32 = vld [vmem:[%s7719_s7 + $0x110] sm:$0xff]  ;;  %v4559_v34 = vld [vmem:[%s7719_s7 + $0x118] sm:$0xff] }
 0x206   :  { %v715_v38 = vsub.f32 %v614_v14, %v714_v37  ;;  %v716_v39 = vsub.f32 %v615_v10, %v714_v37  ;;  %v717_v40 = vsub.f32 %v616_v15, %v714_v37  ;;  %v718_v41 = vsub.f32 %v617_v11, %v714_v37  ;;  %v1292_v37 = vld [vmem:[%s7719_s7 + $0x38] sm:$0xff] }
 0x208   :  { %v719_v42 = vmul.f32 %v715_v38, %v715_v38  ;;  %v720_v43 = vmul.f32 %v716_v39, %v716_v39  ;;  %v721_v44 = vmul.f32 %v717_v40, %v717_v40  ;;  %v722_v45 = vmul.f32 %v718_v41, %v718_v41 }
 0x20a   :  { %v723_v46 = vsel %vm620_vm3, %v719_v42, 0.0  ;;  %v724_v47 = vsel %vm620_vm3, %v721_v44, 0.0  ;;  %v726_v48 = vsel %vm624_vm2, %v720_v43, 0.0  ;;  %v727_v49 = vsel %vm624_vm2, %v722_v45, 0.0  ;;  %v1295_v42 = vld [vmem:[%s7719_s7 + $0x50] sm:$0xff]  ;;  %v1296_v43 = vld [vmem:[%s7719_s7 + $0x58] sm:$0xff] }
 0x20b   :  { %v725_v50 = vadd.f32 %v724_v47, %v723_v46  ;;  %v728_v52 = vadd.f32 %v727_v49, %v726_v48  ;;  %v6167_v44 = vpack.c.bf16 %v1296_v43, %v1295_v42  ;;  %v1297_v45 = vld [vmem:[%s7719_s7 + $0x60] sm:$0xff]  ;;  %v1298_v46 = vld [vmem:[%s7719_s7 + $0x68] sm:$0xff] }
 0x20c   :  { %v6170_v47 = vpack.c.bf16 %v1298_v46, %v1297_v45  ;;  %v4564_v42 = vld [vmem:[%s7719_s7 + $0x140] sm:$0xff]  ;;  %v4565_v43 = vld [vmem:[%s7719_s7 + $0x148] sm:$0xff]  ;;  %v4568_v45 = vld [vmem:[%s7720_s8 + $0x30] sm:$0xff] }
 0x20d   :  { %v729_v53 = vsel %vm620_vm3, %v725_v50, 0.0  ;;  %v730_v54 = vsel %vm624_vm2, %v728_v52, 0.0  ;;  %v4569_v46 = vld [vmem:[%s7720_s8 + $0x38] sm:$0xff] }
 0x20e   :  { %v731_v55 = vadd.f32 %v730_v54, %v729_v53 }
 0x210   :  { %v732_v56 = vrot.slane %v731_v55, 4 }
 0x212   :  { %v733_v57 = vadd.f32 %v732_v56, %v731_v55 }
 0x214   :  { %v734_v58 = vrot.slane %v733_v57, 2 }
 0x216   :  { %v735_v59 = vadd.f32 %v734_v58, %v733_v57 }
 0x218   :  { %v736_v60 = vrot.slane %v735_v59, 1 }
 0x21a   :  { %v737_v61 = vadd.f32 %v736_v60, %v735_v59  ;;  %v4536_v59 = vld [vmem:[%s7719_s7 + $0x70] sm:$0xff]  ;;  %v4537_v60 = vld [vmem:[%s7719_s7 + $0x78] sm:$0xff] }
 0x21c   :  { %5279 = vmatmul.mubr.msk.f32.vlgmr.msra.gmra.mrb[2].mxu1 %vm620_vm3, %v737_v61 }
 0x21d   :  { %5292 = vmatprep.mubr.msk.f32.mxu1 %vm6618_vm1, %v6619_v6 }
 0x2ef   :  { %v807_v62 = vpop.f32.mrb[2].mxu1 }
 0x2f0   :  { %v811_v63 = vmul.f32 0.0025510204, %v807_v62  ;;  %v5280_v0 = vpop.f32.mrb[3].mxu1 }
 0x2f2   :  { %v812_v1 = vadd.f32 1e-05, %v811_v63  ;;  %v6194_v63 = vpack.c.bf16 %v4537_v60, %v4536_v59 }
 0x2f4   :  { %6580 = vrsqrt.f32 %v812_v1 }
 0x2fe   :  { %v6581_v3 = vpop.eup %6580 }
 0x2ff   :  { %v814_v4 = vmul.f32 %v6581_v3, %v618_v2 }
 0x301   :  { %v819_v5 = vrot.slane %v814_v4, %v6897_v33  ;;  %v4538_v4 = vld [vmem:[%s7719_s7 + $0x80] sm:$0xff] }
 0x303   :  { %v821_v8 = vmul.f32 %v819_v5, %v715_v38  ;;  %v822_v9 = vmul.f32 %v819_v5, %v716_v39  ;;  %v823_v10 = vmul.f32 %v819_v5, %v717_v40  ;;  %v824_v11 = vmul.f32 %v819_v5, %v718_v41  ;;  %v1293_v39 = vld [vmem:[%s7719_s7 + $0x40] sm:$0xff]  ;;  %v1294_v40 = vld [vmem:[%s7719_s7 + $0x48] sm:$0xff] }
 0x304   :  { %v6161_v38 = vpack.c.bf16 %v1292_v37, %v1291_v36  ;;  %v6164_v41 = vpack.c.bf16 %v1294_v40, %v1293_v39  ;;  %v4539_v5 = vld [vmem:[%s7719_s7 + $0x88] sm:$0xff]  ;;  %v4560_v36 = vld [vmem:[%s7719_s7 + $0x120] sm:$0xff]  ;;  %v4562_v39 = vld [vmem:[%s7719_s7 + $0x130] sm:$0xff] }
 0x305   :  { %v831_v12 = vadd.f32 %v4521_v7, %v821_v8  ;;  %v832_v13 = vadd.f32 %v4521_v7, %v822_v9  ;;  %v833_v14 = vadd.f32 %v4521_v7, %v823_v10  ;;  %v834_v15 = vadd.f32 %v4521_v7, %v824_v11  ;;  %v4540_v8 = vld [vmem:[%s7719_s7 + $0x90] sm:$0xff]  ;;  %v4541_v9 = vld [vmem:[%s7719_s7 + $0x98] sm:$0xff]  ;;  %v4542_v11 = vld [vmem:[%s7719_s7 + $0xa0] sm:$0xff] }
 0x306   :  { %v6197_v7 = vpack.c.bf16 %v4539_v5, %v4538_v4  ;;  %v6200_v10 = vpack.c.bf16 %v4541_v9, %v4540_v8  ;;  %v4561_v37 = vld [vmem:[%s7719_s7 + $0x128] sm:$0xff]  ;;  %v4563_v40 = vld [vmem:[%s7719_s7 + $0x138] sm:$0xff]  ;;  %v1765_v8 = vld [vmem:[%s7720_s8] sm:$0xff] }
 0x307   :  { %v835_v16 = vmax.f32 %v831_v12, 0.0  ;;  %v836_v17 = vmax.f32 %v832_v13, 0.0  ;;  %v837_v18 = vmax.f32 %v833_v14, 0.0  ;;  %v838_v19 = vmax.f32 %v834_v15, 0.0  ;;  %v4543_v12 = vld [vmem:[%s7719_s7 + $0xa8] sm:$0xff]  ;;  %v4544_v14 = vld [vmem:[%s7719_s7 + $0xb0] sm:$0xff] }
 0x308   :  { %v6203_v13 = vpack.c.bf16 %v4543_v12, %v4542_v11  ;;  %v4545_v15 = vld [vmem:[%s7719_s7 + $0xb8] sm:$0xff]  ;;  %v1766_v9 = vld [vmem:[%s7720_s8 + $0x8] sm:$0xff]  ;;  %v1767_v11 = vld [vmem:[%s7720_s8 + $0x10] sm:$0xff] }
 0x309   :  { %v6128_v21 = vpack.c.bf16 %v836_v17, %v835_v16  ;;  %v6132_v22 = vpack.c.bf16 %v838_v19, %v837_v18  ;;  %v6206_v16 = vpack.c.bf16 %v4545_v15, %v4544_v14  ;;  %v4546_v17 = vld [vmem:[%s7719_s7 + $0xc0] sm:$0xff]  ;;  %v4547_v18 = vld [vmem:[%s7719_s7 + $0xc8] sm:$0xff]  ;;  %v1768_v12 = vld [vmem:[%s7720_s8 + $0x18] sm:$0xff] }
 0x30a   :  { %v6209_v19 = vpack.c.bf16 %v4547_v18, %v4546_v17  ;;  %v6299_v15 = vpack.c.bf16 %v1768_v12, %v1767_v11  ;;  %v1770_v17 = vld [vmem:[%s7720_s8 + $0x28] sm:$0xff] }
 0x30b   :  { %6130 = vmatpush3.bf16.msk.msra.mxu0 %vm6916_vm6, %v6128_v21  ;;  %6134 = vmatpush3.bf16.msk.msra.mxu1 %vm6916_vm6, %v6132_v22 }
 0x30c   :  { %6135 = vmatprep.subr.bf16.mxu0 %v6617_v51  ;;  %6139 = vmatprep.subr.bf16.mxu1 %v6617_v51 }
 0x30e   :  { %5286 = vmatmul.mubr.msk.f32.vlgmr.msra.gmra.mrb[4].mxu0 %vm840_vm7, %v839_v23  ;;  %5293 = vmatmul.mubr.msk.f32.vlgmr.msra.gmra.mrb[4].mxu1 %vm840_vm7, %v839_v23  ;;  %v4552_v23 = vld [vmem:[%s7719_s7 + $0xe0] sm:$0xff] }
 0x30f   :  { %6138 = vmatpush3.bf16.msk.msra.mxu0 %vm6916_vm6, %v6128_v21  ;;  %6142 = vmatpush3.bf16.msk.msra.mxu1 %vm6916_vm6, %v6132_v22 }
 0x310   :  { %5299 = vmatprep.mubr.msk.f32.mxu0 %vm6618_vm1, %v6619_v6  ;;  %5306 = vmatprep.mubr.msk.f32.mxu1 %vm6618_vm1, %v6619_v6 }
 0x311   :  { %6143 = vmatprep.subr.bf16.mxu0 %v6617_v51  ;;  %6147 = vmatprep.subr.bf16.mxu1 %v6617_v51 }
 0x312   :  { %5300 = vmatmul.mubr.msk.f32.vlgmr.msra.gmra.mrb[6].mxu0 %vm840_vm7, %v992_v24  ;;  %5307 = vmatmul.mubr.msk.f32.vlgmr.msra.gmra.mrb[6].mxu1 %vm840_vm7, %v992_v24  ;;  %v4553_v24 = vld [vmem:[%s7719_s7 + $0xe8] sm:$0xff] }
 0x313   :  { %6146 = vmatpush3.bf16.msk.msra.mxu0 %vm6916_vm6, %v6128_v21  ;;  %6150 = vmatpush3.bf16.msk.msra.mxu1 %vm6916_vm6, %v6132_v22  ;;  %v4549_v21 = vld [vmem:[%s7719_s7 + $0xd8] sm:$0xff]  ;;  %v6236_v25 = vpack.c.bf16 %v4553_v24, %v4552_v23 }
 0x314   :  { %5313 = vmatprep.mubr.msk.f32.mxu0 %vm6618_vm1, %v6619_v6  ;;  %5320 = vmatprep.mubr.msk.f32.mxu1 %vm6618_vm1, %v6619_v6  ;;  %v6212_v22 = vpack.c.bf16 %v4549_v21, %v4548_v20  ;;  %v4579_v20 = vld [vmem:[%s7720_s8 + $0x68] sm:$0xff]  ;;  %v4581_v23 = vld [vmem:[%s7720_s8 + $0x78] sm:$0xff] }
 0x315   :  { %6151 = vmatprep.subr.bf16.mxu0 %v6617_v51  ;;  %6172 = vmatprep.subr.bf16.mxu1 %v6617_v51 }
 0x316   :  { %5314 = vmatmul.mubr.msk.f32.vlgmr.msra.gmra.mrb[8].mxu0 %vm840_vm7, %v1139_v27  ;;  %5321 = vmatmul.mubr.msk.f32.vlgmr.msra.gmra.mrb[8].mxu1 %vm840_vm7, %v1139_v27  ;;  %v4555_v27 = vld [vmem:[%s7719_s7 + $0xf8] sm:$0xff] }
 0x317   :  { %6153 = vmatpush3.bf16.msra.mxu0 %v6152_v28  ;;  %6174 = vmatpush3.bf16.msra.mxu1 %v6152_v28  ;;  %v6239_v28 = vpack.c.bf16 %v4555_v27, %v4554_v26  ;;  %v4582_v27 = vld [vmem:[%s7720_s8 + $0x80] sm:$0xff] }
 0x318   :  { %6154 = vmatprep.subr.bf16.mxu0 %v6617_v51  ;;  %6175 = vmatprep.subr.bf16.mxu1 %v6617_v51 }
 0x319   :  { %5351 = vmatprep.mubr.msk.f32.mxu0 %vm6618_vm1, %v6619_v6  ;;  %5382 = vmatprep.mubr.msk.f32.mxu1 %vm6618_vm1, %v6619_v6 }
 0x31b   :  { %6156 = vmatpush3.bf16.msra.mxu0 %v6155_v31  ;;  %6177 = vmatpush3.bf16.msra.mxu1 %v6155_v31  ;;  %v6242_v31 = vpack.c.bf16 %v4557_v30, %v4556_v29 }
 0x31c   :  { %6157 = vmatprep.subr.bf16.mxu0 %v6617_v51  ;;  %6178 = vmatprep.subr.bf16.mxu1 %v6617_v51 }
 0x31f   :  { %6159 = vmatpush3.bf16.msra.mxu0 %v6158_v35  ;;  %6180 = vmatpush3.bf16.msra.mxu1 %v6158_v35  ;;  %v6245_v35 = vpack.c.bf16 %v4559_v34, %v4558_v32  ;;  %v72_v32 = vld [vmem:[%s7724_s12] sm:$0xff]  ;;  %v73_v34 = vld [vmem:[%s7724_s12 + $0x8] sm:$0xff] }
 0x320   :  { %6160 = vmatprep.subr.bf16.mxu0 %v6617_v51  ;;  %6181 = vmatprep.subr.bf16.mxu1 %v6617_v51 }
 0x323   :  { %6162 = vmatpush3.bf16.msra.mxu0 %v6161_v38  ;;  %6183 = vmatpush3.bf16.msra.mxu1 %v6161_v38  ;;  %v6248_v38 = vpack.c.bf16 %v4561_v37, %v4560_v36  ;;  %v74_v36 = vld [vmem:[%s7724_s12 + $0x10] sm:$0xff]  ;;  %v75_v37 = vld [vmem:[%s7724_s12 + $0x18] sm:$0xff] }
 0x324   :  { %6163 = vmatprep.subr.bf16.mxu0 %v6617_v51  ;;  %6184 = vmatprep.subr.bf16.mxu1 %v6617_v51 }
 0x327   :  { %6165 = vmatpush3.bf16.msra.mxu0 %v6164_v41  ;;  %6186 = vmatpush3.bf16.msra.mxu1 %v6164_v41  ;;  %v6251_v41 = vpack.c.bf16 %v4563_v40, %v4562_v39  ;;  %v76_v39 = vld [vmem:[%s7724_s12 + $0x20] sm:$0xff]  ;;  %v77_v40 = vld [vmem:[%s7724_s12 + $0x28] sm:$0xff] }
 0x328   :  { %6166 = vmatprep.subr.bf16.mxu0 %v6617_v51  ;;  %6187 = vmatprep.subr.bf16.mxu1 %v6617_v51 }
 0x32b   :  { %6168 = vmatpush3.bf16.msra.mxu0 %v6167_v44  ;;  %6189 = vmatpush3.bf16.msra.mxu1 %v6167_v44  ;;  %v6254_v44 = vpack.c.bf16 %v4565_v43, %v4564_v42 }
 0x32c   :  { %6169 = vmatprep.subr.bf16.mxu0 %v6617_v51  ;;  %6190 = vmatprep.subr.bf16.mxu1 %v6617_v51 }
 0x32f   :  { %6171 = vmatpush3.bf16.msra.mxu0 %v6170_v47  ;;  %6192 = vmatpush3.bf16.msra.mxu1 %v6170_v47  ;;  %v6278_v47 = vpack.c.bf16 %v4569_v46, %v4568_v45 }
 0x330   :  { %6193 = vmatprep.subr.bf16.mxu0 %v6617_v51  ;;  %6214 = vmatprep.subr.bf16.mxu1 %v6617_v51 }
 0x3e1   :  { %v914_v48 = vpop.f32.mrb[4].mxu0  ;;  %v987_v49 = vpop.f32.mrb[4].mxu1 }
 0x3e2   :  { %v5287_v50 = vpop.f32.mrb[5].mxu0  ;;  %v5294_v52 = vpop.f32.mrb[5].mxu1 }
 0x3e3   :  { %v4572_v52 = vld [vmem:[%s7720_s8 + $0x50] sm:$0xff] }
 0x3e5   :  { %v1062_v53 = vpop.f32.mrb[6].mxu0  ;;  %v1132_v54 = vpop.f32.mrb[6].mxu1 }
 0x3e6   :  { %v1136_v55 = vmax.f32 %v914_v48, %v1062_v53  ;;  %v1137_v56 = vmax.f32 %v987_v49, %v1132_v54  ;;  %v5301_v57 = vpop.f32.mrb[7].mxu0  ;;  %v5308_v58 = vpop.f32.mrb[7].mxu1  ;;  %v4570_v48 = vld [vmem:[%s7720_s8 + $0x40] sm:$0xff]  ;;  %v4571_v49 = vld [vmem:[%s7720_s8 + $0x48] sm:$0xff]  ;;  %v4573_v53 = vld [vmem:[%s7720_s8 + $0x58] sm:$0xff] }
 0x3e7   :  { %v6281_v50 = vpack.c.bf16 %v4571_v49, %v4570_v48  ;;  %v6284_v54 = vpack.c.bf16 %v4573_v53, %v4572_v52 }
 0x3e9   :  { %v1209_v61 = vpop.f32.mrb[8].mxu0  ;;  %v1279_v62 = vpop.f32.mrb[8].mxu1 }
 0x3ea   :  { %v7018_v0 = vmax.f32 %v1136_v55, %v1209_v61  ;;  %v7020_v1 = vmax.f32 %v1137_v56, %v1279_v62  ;;  %v5315_v2 = vpop.f32.mrb[9].mxu0  ;;  %v5322_v3 = vpop.f32.mrb[9].mxu1 }
 0x3ec   :  { %5352 = vmatmul.mubr.msk.f32.vlgmr.msra.gmra.mrb[10].mxu0 %vm620_vm3, %v7018_v0  ;;  %5383 = vmatmul.mubr.msk.f32.vlgmr.msra.gmra.mrb[10].mxu1 %vm620_vm3, %v7020_v1 }
 0x3ed   :  { %6195 = vmatpush3.bf16.msra.mxu0 %v6194_v63  ;;  %6216 = vmatpush3.bf16.msra.mxu1 %v6194_v63 }
 0x3ee   :  { %6196 = vmatprep.subr.bf16.mxu0 %v6617_v51  ;;  %6217 = vmatprep.subr.bf16.mxu1 %v6617_v51 }
 0x3ef   :  { %5413 = vmatprep.mubr.msk.f32.mxu0 %vm6618_vm1, %v6619_v6  ;;  %5444 = vmatprep.mubr.msk.f32.mxu1 %vm6618_vm1, %v6619_v6 }
 0x3f1   :  { %6198 = vmatpush3.bf16.msra.mxu0 %v6197_v7  ;;  %6219 = vmatpush3.bf16.msra.mxu1 %v6197_v7 }
 0x3f2   :  { %6199 = vmatprep.subr.bf16.mxu0 %v6617_v51  ;;  %6220 = vmatprep.subr.bf16.mxu1 %v6617_v51 }
 0x3f5   :  { %6201 = vmatpush3.bf16.msra.mxu0 %v6200_v10  ;;  %6222 = vmatpush3.bf16.msra.mxu1 %v6200_v10  ;;  %v6296_v10 = vpack.c.bf16 %v1766_v9, %v1765_v8 }
 0x3f6   :  { %6202 = vmatprep.subr.bf16.mxu0 %v6617_v51  ;;  %6223 = vmatprep.subr.bf16.mxu1 %v6617_v51 }
 0x3f9   :  { %6204 = vmatpush3.bf16.msra.mxu0 %v6203_v13  ;;  %6225 = vmatpush3.bf16.msra.mxu1 %v6203_v13 }
 0x3fa   :  { %6205 = vmatprep.subr.bf16.mxu0 %v6617_v51  ;;  %6226 = vmatprep.subr.bf16.mxu1 %v6617_v51 }
 0x3fd   :  { %6207 = vmatpush3.bf16.msra.mxu0 %v6206_v16  ;;  %6228 = vmatpush3.bf16.msra.mxu1 %v6206_v16  ;;  %v1769_v16 = vld [vmem:[%s7720_s8 + $0x20] sm:$0xff] }
 0x3fe   :  { %6208 = vmatprep.subr.bf16.mxu0 %v6617_v51  ;;  %6229 = vmatprep.subr.bf16.mxu1 %v6617_v51  ;;  %v6302_v18 = vpack.c.bf16 %v1770_v17, %v1769_v16 }
 0x401   :  { %6210 = vmatpush3.bf16.msra.mxu0 %v6209_v19  ;;  %6231 = vmatpush3.bf16.msra.mxu1 %v6209_v19  ;;  %v4578_v19 = vld [vmem:[%s7720_s8 + $0x60] sm:$0xff] }
 0x402   :  { %6211 = vmatprep.subr.bf16.mxu0 %v6617_v51  ;;  %6232 = vmatprep.subr.bf16.mxu1 %v6617_v51  ;;  %v6314_v21 = vpack.c.bf16 %v4579_v20, %v4578_v19 }
 0x405   :  { %6213 = vmatpush3.bf16.msra.mxu0 %v6212_v22  ;;  %6234 = vmatpush3.bf16.msra.mxu1 %v6212_v22  ;;  %v4580_v22 = vld [vmem:[%s7720_s8 + $0x70] sm:$0xff] }
 0x406   :  { %6235 = vmatprep.subr.bf16.mxu0 %v6617_v51  ;;  %6256 = vmatprep.subr.bf16.mxu1 %v6617_v51  ;;  %v6317_v26 = vpack.c.bf16 %v4581_v23, %v4580_v22 }
 0x408   :  { %5414 = vmatmul.mubr.msk.f32.vlgmr.msra.gmra.mrb[12].mxu0 %vm620_vm3, %v7018_v0  ;;  %5445 = vmatmul.mubr.msk.f32.vlgmr.msra.gmra.mrb[12].mxu1 %vm620_vm3, %v7020_v1 }
 0x409   :  { %6237 = vmatpush3.bf16.msra.mxu0 %v6236_v25  ;;  %6258 = vmatpush3.bf16.msra.mxu1 %v6236_v25 }
 0x40a   :  { %6238 = vmatprep.subr.bf16.mxu0 %v6617_v51  ;;  %6259 = vmatprep.subr.bf16.mxu1 %v6617_v51 }
 0x40b   :  { %5475 = vmatprep.mubr.msk.f32.mxu0 %vm6618_vm1, %v6619_v6  ;;  %5506 = vmatprep.mubr.msk.f32.mxu1 %vm6618_vm1, %v6619_v6 }
 0x40d   :  { %6240 = vmatpush3.bf16.msra.mxu0 %v6239_v28  ;;  %6261 = vmatpush3.bf16.msra.mxu1 %v6239_v28  ;;  %v4583_v28 = vld [vmem:[%s7720_s8 + $0x88] sm:$0xff] }
 0x40e   :  { %6241 = vmatprep.subr.bf16.mxu0 %v6617_v51  ;;  %6262 = vmatprep.subr.bf16.mxu1 %v6617_v51  ;;  %v6320_v29 = vpack.c.bf16 %v4583_v28, %v4582_v27 }
 0x411   :  { %6243 = vmatpush3.bf16.msra.mxu0 %v6242_v31  ;;  %6264 = vmatpush3.bf16.msra.mxu1 %v6242_v31 }
 0x412   :  { %6244 = vmatprep.subr.bf16.mxu0 %v6617_v51  ;;  %6265 = vmatprep.subr.bf16.mxu1 %v6617_v51 }
 0x415   :  { %6246 = vmatpush3.bf16.msra.mxu0 %v6245_v35  ;;  %6267 = vmatpush3.bf16.msra.mxu1 %v6245_v35  ;;  %v7260_v35 = vpack.c.bf16 %v73_v34, %v72_v32  ;;  %v4598_v32 = vld [vmem:[%s7720_s8 + $0xd0] sm:$0xff]  ;;  %v4599_v34 = vld [vmem:[%s7720_s8 + $0xd8] sm:$0xff] }
 0x416   :  { %6247 = vmatprep.subr.bf16.mxu0 %v6617_v51  ;;  %6268 = vmatprep.subr.bf16.mxu1 %v6617_v51 }
 0x419   :  { %6249 = vmatpush3.bf16.msra.mxu0 %v6248_v38  ;;  %6270 = vmatpush3.bf16.msra.mxu1 %v6248_v38  ;;  %v7272_v38 = vpack.c.bf16 %v75_v37, %v74_v36  ;;  %v6353_v36 = vpack.c.bf16 %v4599_v34, %v4598_v32  ;;  %v4600_v37 = vld [vmem:[%s7720_s8 + $0xe0] sm:$0xff] }
 0x41a   :  { %6250 = vmatprep.subr.bf16.mxu0 %v6617_v51  ;;  %6271 = vmatprep.subr.bf16.mxu1 %v6617_v51  ;;  %v4615_v32 = vld [vmem:[%s7721_s9 + $0x1] ss:$0 sm:$0xff] }
 0x41d   :  { %6252 = vmatpush3.bf16.msra.mxu0 %v6251_v41  ;;  %6273 = vmatpush3.bf16.msra.mxu1 %v6251_v41  ;;  %v7284_v41 = vpack.c.bf16 %v77_v40, %v76_v39  ;;  %v4601_v39 = vld [vmem:[%s7720_s8 + $0xe8] sm:$0xff] }
 0x41e   :  { %6253 = vmatprep.subr.bf16.mxu0 %v6617_v51  ;;  %6274 = vmatprep.subr.bf16.mxu1 %v6617_v51  ;;  %v6356_v40 = vpack.c.bf16 %v4601_v39, %v4600_v37 }
 0x421   :  { %6255 = vmatpush3.bf16.msra.mxu0 %v6254_v44  ;;  %6276 = vmatpush3.bf16.msra.mxu1 %v6254_v44 }
 0x422   :  { %6277 = vmatprep.subr.bf16.mxu0 %v6617_v51  ;;  %6286 = vmatprep.subr.bf16.mxu1 %v6617_v51 }
 0x424   :  { %5476 = vmatmul.mubr.msk.f32.vlgmr.msra.gmra.mrb[14].mxu0 %vm620_vm3, %v7018_v0  ;;  %5507 = vmatmul.mubr.msk.f32.vlgmr.msra.gmra.mrb[14].mxu1 %vm620_vm3, %v7020_v1 }
 0x425   :  { %5521 = vmatprep.mubr.msk.f32.mxu0 %vm6618_vm1, %v6619_v6  ;;  %5536 = vmatprep.mubr.msk.f32.mxu1 %vm6618_vm1, %v6619_v6 }
 0x426   :  { %6279 = vmatpush3.bf16.msra.mxu0 %v6278_v47  ;;  %6288 = vmatpush3.bf16.msra.mxu1 %v6278_v47 }
 0x427   :  { %6280 = vmatprep.subr.bf16.mxu0 %v6617_v51  ;;  %6289 = vmatprep.subr.bf16.mxu1 %v6617_v51 }
 0x42a   :  { %6282 = vmatpush3.bf16.msra.mxu0 %v6281_v50  ;;  %6291 = vmatpush3.bf16.msra.mxu1 %v6281_v50 }
 0x42b   :  { %6283 = vmatprep.subr.bf16.mxu0 %v6617_v51  ;;  %6292 = vmatprep.subr.bf16.mxu1 %v6617_v51 }
 0x42e   :  { %6285 = vmatpush3.bf16.msra.mxu0 %v6284_v54  ;;  %6294 = vmatpush3.bf16.msra.mxu1 %v6284_v54  ;;  %v4586_v54 = vld [vmem:[%s7721_s9] ss:$0 sm:$0xff] }
 0x42f   :  { %6295 = vmatprep.subr.bf16.mxu0 %v6617_v51  ;;  %6304 = vmatprep.subr.bf16.mxu1 %v6617_v51 }
 0x4bf   :  { %v1368_v55 = vpop.f32.mrb[10].mxu0  ;;  %v1441_v56 = vpop.f32.mrb[10].mxu1 }
 0x4c0   :  { %v5353_v57 = vpop.f32.mrb[11].mxu0  ;;  %v5384_v58 = vpop.f32.mrb[11].mxu1 }
 0x4db   :  { %v1526_v59 = vpop.f32.mrb[12].mxu0  ;;  %v1596_v60 = vpop.f32.mrb[12].mxu1 }
 0x4dc   :  { %v1600_v61 = vmax.f32 %v1368_v55, %v1526_v59  ;;  %v1601_v62 = vmax.f32 %v1441_v56, %v1596_v60  ;;  %v5415_v63 = vpop.f32.mrb[13].mxu0  ;;  %v5446_v0 = vpop.f32.mrb[13].mxu1 }
 0x4f7   :  { %v1683_v1 = vpop.f32.mrb[14].mxu0  ;;  %v1753_v2 = vpop.f32.mrb[14].mxu1 }
 0x4f8   :  { %v7180_v3 = vmax.f32 %v1600_v61, %v1683_v1  ;;  %v7182_v4 = vmax.f32 %v1601_v62, %v1753_v2  ;;  %v5477_v5 = vpop.f32.mrb[15].mxu0  ;;  %v5508_v7 = vpop.f32.mrb[15].mxu1 }
 0x4fa   :  { %1763 = vst.msk [vmem:[#allocation2 + $0x1] sm:$0x3f] %vm1762_vm9, %v7180_v3  ;;  %1764 = vst.msk [vmem:[#allocation2 + $0x9] sm:$0x3f] %vm1762_vm9, %v7182_v4 }
 0x501   :  { %v1780_v13 = vld [vmem:[#allocation2 + $0x1] sm:$0x3f]  ;;  %v1781_v14 = vld [vmem:[#allocation2 + $0x9] sm:$0x3f] }
 0x502   :  { %5522 = vmatmul.mubr.msk.f32.vlgmr.msra.gmra.mrb[16].mxu0 %vm1759_vm8, %v1780_v13  ;;  %5537 = vmatmul.mubr.msk.f32.vlgmr.msra.gmra.mrb[16].mxu1 %vm1759_vm8, %v1781_v14  ;;  %v1771_v24 = vld [vmem:[#allocation2] sm:$0x3f]  ;;  %v1772_v25 = vld [vmem:[#allocation2 + $0x8] sm:$0x3f] }
 0x503   :  { %6297 = vmatpush3.bf16.msra.mxu0 %v6296_v10  ;;  %6306 = vmatpush3.bf16.msra.mxu1 %v6296_v10  ;;  %v2081_v30 = vld [vmem:[#allocation2 + $0x2] sm:$0x3f]  ;;  %v2082_v31 = vld [vmem:[#allocation2 + $0xa] sm:$0x3f] }
 0x504   :  { %6298 = vmatprep.subr.bf16.mxu0 %v6617_v51  ;;  %6307 = vmatprep.subr.bf16.mxu1 %v6617_v51 }
 0x505   :  { %5551 = vmatprep.mubr.msk.f32.mxu0 %vm6618_vm1, %v6619_v6  ;;  %5566 = vmatprep.mubr.msk.f32.mxu1 %vm6618_vm1, %v6619_v6 }
 0x507   :  { %6300 = vmatpush3.bf16.msra.mxu0 %v6299_v15  ;;  %6309 = vmatpush3.bf16.msra.mxu1 %v6299_v15 }
 0x508   :  { %6301 = vmatprep.subr.bf16.mxu0 %v6617_v51  ;;  %6310 = vmatprep.subr.bf16.mxu1 %v6617_v51 }
 0x50b   :  { %6303 = vmatpush3.bf16.msra.mxu0 %v6302_v18  ;;  %6312 = vmatpush3.bf16.msra.mxu1 %v6302_v18 }
 0x50c   :  { %6313 = vmatprep.subr.bf16.mxu0 %v6617_v51  ;;  %6322 = vmatprep.subr.bf16.mxu1 %v6617_v51 }
 0x50e   :  { %5552 = vmatmul.mubr.msk.f32.vlgmr.msra.gmra.mrb[18].mxu0 %vm1759_vm8, %v1771_v24  ;;  %5567 = vmatmul.mubr.msk.f32.vlgmr.msra.gmra.mrb[18].mxu1 %vm1759_vm8, %v1772_v25 }
 0x50f   :  { %6315 = vmatpush3.bf16.msra.mxu0 %v6314_v21  ;;  %6324 = vmatpush3.bf16.msra.mxu1 %v6314_v21 }
 0x510   :  { %6316 = vmatprep.subr.bf16.mxu0 %v6617_v51  ;;  %6325 = vmatprep.subr.bf16.mxu1 %v6617_v51 }
 0x511   :  { %5581 = vmatprep.mubr.msk.f32.mxu0 %vm6618_vm1, %v6619_v6  ;;  %5596 = vmatprep.mubr.msk.f32.mxu1 %vm6618_vm1, %v6619_v6 }
 0x513   :  { %6318 = vmatpush3.bf16.msra.mxu0 %v6317_v26  ;;  %6327 = vmatpush3.bf16.msra.mxu1 %v6317_v26 }
 0x514   :  { %6319 = vmatprep.subr.bf16.mxu0 %v6617_v51  ;;  %6328 = vmatprep.subr.bf16.mxu1 %v6617_v51 }
 0x517   :  { %6321 = vmatpush3.bf16.msra.mxu0 %v6320_v29  ;;  %6330 = vmatpush3.bf16.msra.mxu1 %v6320_v29  ;;  %v4596_v29 = vld [vmem:[%s7720_s8 + $0xc0] sm:$0xff] }
 0x518   :  { %6331 = vmatprep.subr.bf16.mxu0 %v6617_v51  ;;  %6340 = vmatprep.subr.bf16.mxu1 %v6617_v51 }
 0x51a   :  { %5582 = vmatmul.mubr.msk.f32.vlgmr.msra.gmra.mrb[20].mxu0 %vm1759_vm8, %v2081_v30  ;;  %5597 = vmatmul.mubr.msk.f32.vlgmr.msra.gmra.mrb[20].mxu1 %vm1759_vm8, %v2082_v31  ;;  %v4597_v30 = vld [vmem:[%s7720_s8 + $0xc8] sm:$0xff] }
 0x51b   :  { %5611 = vmatprep.mubr.msk.f32.mxu0 %vm6618_vm1, %v6619_v6  ;;  %5626 = vmatprep.mubr.msk.f32.mxu1 %vm6618_vm1, %v6619_v6  ;;  %v6350_v31 = vpack.c.bf16 %v4597_v30, %v4596_v29 }
 0x51c   :  { %6333 = vmatpush3.bf16.msra.mxu0 %v7260_v35  ;;  %6342 = vmatpush3.bf16.msra.mxu1 %v7260_v35 }
 0x51d   :  { %6334 = vmatprep.subr.bf16.mxu0 %v6617_v51  ;;  %6343 = vmatprep.subr.bf16.mxu1 %v6617_v51 }
 0x520   :  { %6336 = vmatpush3.bf16.msra.mxu0 %v7272_v38  ;;  %6345 = vmatpush3.bf16.msra.mxu1 %v7272_v38 }
 0x521   :  { %6337 = vmatprep.subr.bf16.mxu0 %v6617_v51  ;;  %6346 = vmatprep.subr.bf16.mxu1 %v6617_v51 }
 0x524   :  { %6339 = vmatpush3.bf16.msra.mxu0 %v7284_v41  ;;  %6348 = vmatpush3.bf16.msra.mxu1 %v7284_v41 }
 0x525   :  { %6349 = vmatprep.subr.bf16.mxu0 %v6617_v51  ;;  %6358 = vmatprep.subr.bf16.mxu1 %v6617_v51 }
 0x5d5   :  { %v1851_v42 = vpop.f32.mrb[16].mxu0  ;;  %v1924_v43 = vpop.f32.mrb[16].mxu1 }
 0x5d6   :  { %v5523_v44 = vpop.f32.mrb[17].mxu0  ;;  %v5538_v45 = vpop.f32.mrb[17].mxu1 }
 0x5e1   :  { %v1997_v46 = vpop.f32.mrb[18].mxu0  ;;  %v2070_v47 = vpop.f32.mrb[18].mxu1 }
 0x5e2   :  { %v1998_v48 = vadd.f32 %v1997_v46, %v1851_v42  ;;  %v2071_v49 = vadd.f32 %v2070_v47, %v1924_v43  ;;  %v5553_v50 = vpop.f32.mrb[19].mxu0  ;;  %v5568_v52 = vpop.f32.mrb[19].mxu1  ;;  %v2240_v46 = vld [vmem:[%s7722_s10] sm:$0x1] }
 0x5e3   :  { %v4589_v50 = vld [vmem:[%s7723_s11] ss:$0 sm:$0xff] }
 0x5ed   :  { %v2152_v53 = vpop.f32.mrb[20].mxu0  ;;  %v2225_v55 = vpop.f32.mrb[20].mxu1 }
 0x5ee   :  { %v2229_v56 = vadd.f32 %v2152_v53, %v1998_v48  ;;  %v2230_v57 = vadd.f32 %v2225_v55, %v2071_v49  ;;  %v5583_v58 = vpop.f32.mrb[21].mxu0  ;;  %v5598_v59 = vpop.f32.mrb[21].mxu1 }
 0x5ef   :  { %v4590_v58 = vld [vmem:[%s7720_s8 + $0x90] sm:$0xff]  ;;  %v4591_v59 = vld [vmem:[%s7720_s8 + $0x98] sm:$0xff] }
 0x5f0   :  { %v2238_v60 = vadd.f32 %v4586_v54, %v2229_v56  ;;  %v2239_v61 = vadd.f32 %v4586_v54, %v2230_v57 }
 0x5f2   :  { %v2242_v62 = vsel %vm1762_vm9, %v2238_v60, 0.0  ;;  %v2243_v63 = vsel %vm1762_vm9, %v2239_v61, 0.0 }
 0x5f3   :  { %v2244_v0 = vadd.f32 %v2243_v63, %v2242_v62  ;;  %v4593_v62 = vld [vmem:[%s7720_s8 + $0xa8] sm:$0xff] }
 0x5f5   :  { %v2245_v1 = vsel %vm1762_vm9, %v2244_v0, 0.0 }
 0x5f6   :  { %v2246_v2 = vrot.slane %v2245_v1, 4 }
 0x5f8   :  { %v2247_v5 = vadd.f32 %v2246_v2, %v2245_v1  ;;  %v4594_v2 = vld [vmem:[%s7720_s8 + $0xb0] sm:$0xff] }
 0x5fa   :  { %v2248_v7 = vrot.slane %v2247_v5, 2 }
 0x5fc   :  { %v2249_v8 = vadd.f32 %v2248_v7, %v2247_v5  ;;  %v4595_v5 = vld [vmem:[%s7720_s8 + $0xb8] sm:$0xff] }
 0x5fd   :  { %v6374_v7 = vpack.c.bf16 %v4595_v5, %v4594_v2 }
 0x5fe   :  { %v2250_v9 = vrot.slane %v2249_v8, 1 }
 0x600   :  { %v2251_v10 = vadd.f32 %v2250_v9, %v2249_v8  ;;  %v4606_v8 = vld [vmem:[%s7720_s8 + $0xf0] sm:$0xff]  ;;  %v4607_v9 = vld [vmem:[%s7720_s8 + $0xf8] sm:$0xff] }
 0x602   :  { %5612 = vmatmul.mubr.msk.f32.vlgmr.msra.gmra.mrb[22].mxu0 %vm1759_vm8, %v2251_v10  ;;  %v6386_v10 = vpack.c.bf16 %v4607_v9, %v4606_v8 }
 0x603   :  { %5641 = vmatprep.mubr.msk.f32.mxu0 %vm6618_vm1, %v6619_v6  ;;  %6351 = vmatpush3.bf16.msra.mxu0 %v6350_v31 }
 0x604   :  { %6352 = vmatprep.subr.bf16.mxu0 %v6617_v51 }
 0x607   :  { %6354 = vmatpush3.bf16.msra.mxu0 %v6353_v36 }
 0x608   :  { %6355 = vmatprep.subr.bf16.mxu0 %v6617_v51 }
 0x60b   :  { %6357 = vmatpush3.bf16.msra.mxu0 %v6356_v40 }
 0x60c   :  { %6367 = vmatprep.subr.bf16.mxu0 %v6617_v51 }
 0x6d5   :  { %v2321_v11 = vpop.f32.mrb[22].mxu0 }
 0x6d6   :  { %v2325_v12 = vmul.f32 0.013888889, %v2321_v11  ;;  %v5613_v13 = vpop.f32.mrb[23].mxu0  ;;  %v4608_v11 = vld [vmem:[%s7720_s8 + $0x100] sm:$0xff] }
 0x6d8   :  { %v2329_v14 = vrot.slane %v2325_v12, %v6897_v33  ;;  %v4609_v12 = vld [vmem:[%s7720_s8 + $0x108] sm:$0xff] }
 0x6da   :  { %v2330_v15 = vsub.f32 %v2238_v60, %v2329_v14  ;;  %v2331_v16 = vsub.f32 %v2239_v61, %v2329_v14  ;;  %v6368_v60 = vpack.c.bf16 %v4591_v59, %v4590_v58  ;;  %v4592_v61 = vld [vmem:[%s7720_s8 + $0xa0] sm:$0xff] }
 0x6db   :  { %v6371_v1 = vpack.c.bf16 %v4593_v62, %v4592_v61 }
 0x6dc   :  { %v2332_v17 = vmul.f32 %v2330_v15, %v2330_v15  ;;  %v2333_v18 = vmul.f32 %v2331_v16, %v2331_v16 }
 0x6de   :  { %v2334_v19 = vsel %vm1762_vm9, %v2332_v17, 0.0  ;;  %v2335_v20 = vsel %vm1762_vm9, %v2333_v18, 0.0  ;;  %v4611_v17 = vld [vmem:[%s7720_s8 + $0x118] sm:$0xff] }
 0x6df   :  { %v2336_v21 = vadd.f32 %v2335_v20, %v2334_v19 }
 0x6e1   :  { %v2337_v22 = vsel %vm1762_vm9, %v2336_v21, 0.0 }
 0x6e2   :  { %v2338_v23 = vrot.slane %v2337_v22, 4 }
 0x6e4   :  { %v2339_v24 = vadd.f32 %v2338_v23, %v2337_v22 }
 0x6e6   :  { %v2340_v25 = vrot.slane %v2339_v24, 2 }
 0x6e8   :  { %v2341_v26 = vadd.f32 %v2340_v25, %v2339_v24 }
 0x6ea   :  { %v2342_v27 = vrot.slane %v2341_v26, 1 }
 0x6ec   :  { %v2343_v28 = vadd.f32 %v2342_v27, %v2341_v26 }
 0x6ee   :  { %5627 = vmatmul.mubr.msk.f32.vlgmr.msra.gmra.mrb[22].mxu1 %vm1759_vm8, %v2343_v28 }
 0x6ef   :  { %5656 = vmatprep.mubr.msk.f32.mxu1 %vm6618_vm1, %v6619_v6  ;;  %6360 = vmatpush3.bf16.msra.mxu1 %v6350_v31 }
 0x6f0   :  { %6361 = vmatprep.subr.bf16.mxu1 %v6617_v51 }
 0x6f3   :  { %6363 = vmatpush3.bf16.msra.mxu1 %v6353_v36 }
 0x6f4   :  { %6364 = vmatprep.subr.bf16.mxu1 %v6617_v51 }
 0x6f7   :  { %6366 = vmatpush3.bf16.msra.mxu1 %v6356_v40 }
 0x6f8   :  { %6376 = vmatprep.subr.bf16.mxu1 %v6617_v51 }
 0x7c1   :  { %v2413_v42 = vpop.f32.mrb[22].mxu1 }
 0x7c2   :  { %v2417_v43 = vmul.f32 0.013888889, %v2413_v42  ;;  %v5628_v44 = vpop.f32.mrb[23].mxu1 }
 0x7c4   :  { %v2418_v45 = vadd.f32 1e-05, %v2417_v43 }
 0x7c6   :  { %6582 = vrsqrt.f32 %v2418_v45 }
 0x7d0   :  { %v6583_v47 = vpop.eup %6582 }
 0x7d1   :  { %v2420_v48 = vmul.f32 %v6583_v47, %v2240_v46 }
 0x7d3   :  { %v2425_v49 = vrot.slane %v2420_v48, %v6897_v33 }
 0x7d5   :  { %v2427_v52 = vmul.f32 %v2425_v49, %v2330_v15  ;;  %v2428_v53 = vmul.f32 %v2425_v49, %v2331_v16  ;;  %v6389_v15 = vpack.c.bf16 %v4609_v12, %v4608_v11  ;;  %v4610_v16 = vld [vmem:[%s7720_s8 + $0x110] sm:$0xff] }
 0x7d6   :  { %v6392_v18 = vpack.c.bf16 %v4611_v17, %v4610_v16  ;;  %v4627_v12 = vld [vmem:[%s7720_s8 + $0x150] sm:$0xff]  ;;  %v4630_v16 = vld [vmem:[%s7720_s8 + $0x168] sm:$0xff] }
 0x7d7   :  { %v2435_v54 = vadd.f32 %v4589_v50, %v2427_v52  ;;  %v2436_v55 = vadd.f32 %v4589_v50, %v2428_v53 }
 0x7d9   :  { %v2437_v56 = vmax.f32 %v2435_v54, 0.0  ;;  %v2438_v57 = vmax.f32 %v2436_v55, 0.0 }
 0x7db   :  { %2439 = vst.msk [vmem:[#allocation2 + $0x1] sm:$0x3f] %vm1762_vm9, %v2437_v56  ;;  %2440 = vst.msk [vmem:[#allocation2 + $0x9] sm:$0x3f] %vm1762_vm9, %v2438_v57 }
 0x7e2   :  { %v2457_v63 = vld [vmem:[#allocation2 + $0x1] sm:$0x3f]  ;;  %v2458_v0 = vld [vmem:[#allocation2 + $0x9] sm:$0x3f] }
 0x7e3   :  { %5642 = vmatmul.mubr.msk.f32.vlgmr.msra.gmra.mrb[24].mxu0 %vm1759_vm8, %v2457_v63  ;;  %5657 = vmatmul.mubr.msk.f32.vlgmr.msra.gmra.mrb[24].mxu1 %vm1759_vm8, %v2458_v0  ;;  %v2448_v13 = vld [vmem:[#allocation2] sm:$0x3f]  ;;  %v2449_v14 = vld [vmem:[#allocation2 + $0x8] sm:$0x3f] }
 0x7e4   :  { %6369 = vmatpush3.bf16.msra.mxu0 %v6368_v60  ;;  %6378 = vmatpush3.bf16.msra.mxu1 %v6368_v60  ;;  %v2758_v19 = vld [vmem:[#allocation2 + $0x2] sm:$0x3f]  ;;  %v2759_v20 = vld [vmem:[#allocation2 + $0xa] sm:$0x3f] }
 0x7e5   :  { %6370 = vmatprep.subr.bf16.mxu0 %v6617_v51  ;;  %6379 = vmatprep.subr.bf16.mxu1 %v6617_v51 }
 0x7e6   :  { %5671 = vmatprep.mubr.msk.f32.mxu0 %vm6618_vm1, %v6619_v6  ;;  %5686 = vmatprep.mubr.msk.f32.mxu1 %vm6618_vm1, %v6619_v6 }
 0x7e8   :  { %6372 = vmatpush3.bf16.msra.mxu0 %v6371_v1  ;;  %6381 = vmatpush3.bf16.msra.mxu1 %v6371_v1 }
 0x7e9   :  { %6373 = vmatprep.subr.bf16.mxu0 %v6617_v51  ;;  %6382 = vmatprep.subr.bf16.mxu1 %v6617_v51 }
 0x7ec   :  { %6375 = vmatpush3.bf16.msra.mxu0 %v6374_v7  ;;  %6384 = vmatpush3.bf16.msra.mxu1 %v6374_v7 }
 0x7ed   :  { %6385 = vmatprep.subr.bf16.mxu0 %v6617_v51  ;;  %6394 = vmatprep.subr.bf16.mxu1 %v6617_v51 }
 0x7ef   :  { %5672 = vmatmul.mubr.msk.f32.vlgmr.msra.gmra.mrb[26].mxu0 %vm1759_vm8, %v2448_v13  ;;  %5687 = vmatmul.mubr.msk.f32.vlgmr.msra.gmra.mrb[26].mxu1 %vm1759_vm8, %v2449_v14  ;;  %v4628_v13 = vld [vmem:[%s7720_s8 + $0x158] sm:$0xff] }
 0x7f0   :  { %6387 = vmatpush3.bf16.msra.mxu0 %v6386_v10  ;;  %6396 = vmatpush3.bf16.msra.mxu1 %v6386_v10  ;;  %v6422_v14 = vpack.c.bf16 %v4628_v13, %v4627_v12 }
 0x7f1   :  { %6388 = vmatprep.subr.bf16.mxu0 %v6617_v51  ;;  %6397 = vmatprep.subr.bf16.mxu1 %v6617_v51 }
 0x7f2   :  { %5701 = vmatprep.mubr.msk.f32.mxu0 %vm6618_vm1, %v6619_v6  ;;  %5716 = vmatprep.mubr.msk.f32.mxu1 %vm6618_vm1, %v6619_v6 }
 0x7f4   :  { %6390 = vmatpush3.bf16.msra.mxu0 %v6389_v15  ;;  %6399 = vmatpush3.bf16.msra.mxu1 %v6389_v15  ;;  %v4629_v15 = vld [vmem:[%s7720_s8 + $0x160] sm:$0xff] }
 0x7f5   :  { %6391 = vmatprep.subr.bf16.mxu0 %v6617_v51  ;;  %6400 = vmatprep.subr.bf16.mxu1 %v6617_v51  ;;  %v6425_v17 = vpack.c.bf16 %v4630_v16, %v4629_v15  ;;  %v4646_v15 = vld [vmem:[%s7721_s9 + $0x2] ss:$0 sm:$0xff] }
 0x7f8   :  { %6393 = vmatpush3.bf16.msra.mxu0 %v6392_v18  ;;  %6402 = vmatpush3.bf16.msra.mxu1 %v6392_v18  ;;  %v4631_v18 = vld [vmem:[%s7720_s8 + $0x170] sm:$0xff] }
 0x7f9   :  { %6403 = vmatprep.subr.bf16.mxu0 %v6617_v51  ;;  %6412 = vmatprep.subr.bf16.mxu1 %v6617_v51 }
 0x7fb   :  { %5702 = vmatmul.mubr.msk.f32.vlgmr.msra.gmra.mrb[28].mxu0 %vm1759_vm8, %v2758_v19  ;;  %5717 = vmatmul.mubr.msk.f32.vlgmr.msra.gmra.mrb[28].mxu1 %vm1759_vm8, %v2759_v20  ;;  %v4632_v19 = vld [vmem:[%s7720_s8 + $0x178] sm:$0xff] }
 0x7fc   :  { %6405 = vmatpush3.bf16.msra.mxu0 %v7260_v35  ;;  %5731 = vmatprep.mubr.msk.f32.mxu0 %vm6618_vm1, %v6619_v6  ;;  %v6428_v20 = vpack.c.bf16 %v4632_v19, %v4631_v18 }
 0x7fd   :  { %6406 = vmatprep.subr.bf16.mxu0 %v6617_v51  ;;  %6414 = vmatpush3.bf16.msra.mxu1 %v7260_v35 }
 0x7fe   :  { %6415 = vmatprep.subr.bf16.mxu1 %v6617_v51  ;;  %5746 = vmatprep.mubr.msk.f32.mxu1 %vm6618_vm1, %v6619_v6 }
 0x800   :  { %6408 = vmatpush3.bf16.msra.mxu0 %v7272_v38 }
 0x801   :  { %6409 = vmatprep.subr.bf16.mxu0 %v6617_v51  ;;  %6417 = vmatpush3.bf16.msra.mxu1 %v7272_v38 }
 0x802   :  { %6418 = vmatprep.subr.bf16.mxu1 %v6617_v51 }
 0x804   :  { %6411 = vmatpush3.bf16.msra.mxu0 %v7284_v41 }
 0x805   :  { %6420 = vmatpush3.bf16.msra.mxu1 %v7284_v41  ;;  %6421 = vmatprep.subr.bf16.mxu0 %v6617_v51 }
 0x806   :  { %6430 = vmatprep.subr.bf16.mxu1 %v6617_v51 }
 0x8b6   :  { %v2528_v21 = vpop.f32.mrb[24].mxu0  ;;  %v2601_v22 = vpop.f32.mrb[24].mxu1 }
 0x8b7   :  { %v5643_v23 = vpop.f32.mrb[25].mxu0  ;;  %v5658_v24 = vpop.f32.mrb[25].mxu1 }
 0x8c2   :  { %v2674_v25 = vpop.f32.mrb[26].mxu0  ;;  %v2747_v26 = vpop.f32.mrb[26].mxu1 }
 0x8c3   :  { %v2675_v27 = vadd.f32 %v2674_v25, %v2528_v21  ;;  %v2748_v28 = vadd.f32 %v2747_v26, %v2601_v22  ;;  %v5673_v29 = vpop.f32.mrb[27].mxu0  ;;  %v5688_v30 = vpop.f32.mrb[27].mxu1  ;;  %v4616_v25 = vld [vmem:[%s7722_s10 + $0x1] sm:$0x1] }
 0x8c4   :  { %v4620_v29 = vld [vmem:[%s7723_s11 + $0x1] ss:$0 sm:$0xff] }
 0x8ce   :  { %v2829_v31 = vpop.f32.mrb[28].mxu0  ;;  %v2902_v34 = vpop.f32.mrb[28].mxu1 }
 0x8cf   :  { %v2906_v36 = vadd.f32 %v2829_v31, %v2675_v27  ;;  %v2907_v37 = vadd.f32 %v2902_v34, %v2748_v28  ;;  %v5703_v39 = vpop.f32.mrb[29].mxu0  ;;  %v5718_v40 = vpop.f32.mrb[29].mxu1 }
 0x8d1   :  { %v2916_v42 = vadd.f32 %v4615_v32, %v2906_v36  ;;  %v2917_v43 = vadd.f32 %v4615_v32, %v2907_v37 }
 0x8d3   :  { %v2922_v44 = vsel %vm1762_vm9, %v2916_v42, 0.0  ;;  %v2923_v45 = vsel %vm1762_vm9, %v2917_v43, 0.0 }
 0x8d4   :  { %v2924_v46 = vadd.f32 %v2923_v45, %v2922_v44  ;;  %v4624_v44 = vld [vmem:[%s7720_s8 + $0x138] sm:$0xff] }
 0x8d6   :  { %v2925_v47 = vsel %vm1762_vm9, %v2924_v46, 0.0 }
 0x8d7   :  { %v2926_v48 = vrot.slane %v2925_v47, 4 }
 0x8d9   :  { %v2927_v49 = vadd.f32 %v2926_v48, %v2925_v47  ;;  %v4625_v48 = vld [vmem:[%s7720_s8 + $0x140] sm:$0xff] }
 0x8db   :  { %v2928_v50 = vrot.slane %v2927_v49, 2 }
 0x8dd   :  { %v2929_v52 = vadd.f32 %v2928_v50, %v2927_v49  ;;  %v4626_v49 = vld [vmem:[%s7720_s8 + $0x148] sm:$0xff] }
 0x8de   :  { %v6446_v50 = vpack.c.bf16 %v4626_v49, %v4625_v48 }
 0x8df   :  { %v2930_v53 = vrot.slane %v2929_v52, 1 }
 0x8e1   :  { %v2931_v54 = vadd.f32 %v2930_v53, %v2929_v52  ;;  %v4637_v52 = vld [vmem:[%s7720_s8 + $0x180] sm:$0xff]  ;;  %v4638_v53 = vld [vmem:[%s7720_s8 + $0x188] sm:$0xff] }
 0x8e3   :  { %5732 = vmatmul.mubr.msk.f32.vlgmr.msra.gmra.mrb[30].mxu0 %vm1759_vm8, %v2931_v54  ;;  %v6458_v54 = vpack.c.bf16 %v4638_v53, %v4637_v52 }
 0x8e4   :  { %5761 = vmatprep.mubr.msk.f32.mxu0 %vm6618_vm1, %v6619_v6  ;;  %6423 = vmatpush3.bf16.msra.mxu0 %v6422_v14 }
 0x8e5   :  { %6424 = vmatprep.subr.bf16.mxu0 %v6617_v51 }
 0x8e8   :  { %6426 = vmatpush3.bf16.msra.mxu0 %v6425_v17 }
 0x8e9   :  { %6427 = vmatprep.subr.bf16.mxu0 %v6617_v51 }
 0x8ec   :  { %6429 = vmatpush3.bf16.msra.mxu0 %v6428_v20 }
 0x8ed   :  { %6439 = vmatprep.subr.bf16.mxu0 %v6617_v51 }
 0x9b6   :  { %v3001_v55 = vpop.f32.mrb[30].mxu0 }
 0x9b7   :  { %v3005_v56 = vmul.f32 0.013888889, %v3001_v55  ;;  %v5733_v57 = vpop.f32.mrb[31].mxu0  ;;  %v4639_v55 = vld [vmem:[%s7720_s8 + $0x190] sm:$0xff] }
 0x9b9   :  { %v3009_v58 = vrot.slane %v3005_v56, %v6897_v33  ;;  %v4640_v56 = vld [vmem:[%s7720_s8 + $0x198] sm:$0xff] }
 0x9bb   :  { %v3010_v59 = vsub.f32 %v2916_v42, %v3009_v58  ;;  %v3011_v60 = vsub.f32 %v2917_v43, %v3009_v58  ;;  %v4623_v43 = vld [vmem:[%s7720_s8 + $0x130] sm:$0xff] }
 0x9bc   :  { %v6443_v47 = vpack.c.bf16 %v4624_v44, %v4623_v43 }
 0x9bd   :  { %v3012_v61 = vmul.f32 %v3010_v59, %v3010_v59  ;;  %v3013_v62 = vmul.f32 %v3011_v60, %v3011_v60 }
 0x9bf   :  { %v3014_v63 = vsel %vm1762_vm9, %v3012_v61, 0.0  ;;  %v3015_v0 = vsel %vm1762_vm9, %v3013_v62, 0.0  ;;  %v4642_v61 = vld [vmem:[%s7720_s8 + $0x1a8] sm:$0xff] }
 0x9c0   :  { %v3016_v1 = vadd.f32 %v3015_v0, %v3014_v63 }
 0x9c2   :  { %v3017_v2 = vsel %vm1762_vm9, %v3016_v1, 0.0 }
 0x9c3   :  { %v3018_v5 = vrot.slane %v3017_v2, 4 }
 0x9c5   :  { %v3019_v7 = vadd.f32 %v3018_v5, %v3017_v2 }
 0x9c7   :  { %v3020_v8 = vrot.slane %v3019_v7, 2 }
 0x9c9   :  { %v3021_v9 = vadd.f32 %v3020_v8, %v3019_v7 }
 0x9cb   :  { %v3022_v10 = vrot.slane %v3021_v9, 1 }
 0x9cd   :  { %v3023_v11 = vadd.f32 %v3022_v10, %v3021_v9 }
 0x9cf   :  { %5747 = vmatmul.mubr.msk.f32.vlgmr.msra.gmra.mrb[30].mxu1 %vm1759_vm8, %v3023_v11 }
 0x9d0   :  { %5776 = vmatprep.mubr.msk.f32.mxu1 %vm6618_vm1, %v6619_v6  ;;  %6432 = vmatpush3.bf16.msra.mxu1 %v6422_v14 }
 0x9d1   :  { %6433 = vmatprep.subr.bf16.mxu1 %v6617_v51 }
 0x9d4   :  { %6435 = vmatpush3.bf16.msra.mxu1 %v6425_v17 }
 0x9d5   :  { %6436 = vmatprep.subr.bf16.mxu1 %v6617_v51 }
 0x9d8   :  { %6438 = vmatpush3.bf16.msra.mxu1 %v6428_v20 }
 0x9d9   :  { %6448 = vmatprep.subr.bf16.mxu1 %v6617_v51 }
 0xaa2   :  { %v3093_v21 = vpop.f32.mrb[30].mxu1 }
 0xaa3   :  { %v3097_v22 = vmul.f32 0.013888889, %v3093_v21  ;;  %v5748_v23 = vpop.f32.mrb[31].mxu1 }
 0xaa5   :  { %v3098_v24 = vadd.f32 1e-05, %v3097_v22 }
 0xaa7   :  { %6584 = vrsqrt.f32 %v3098_v24 }
 0xab1   :  { %v6585_v26 = vpop.eup %6584 }
 0xab2   :  { %v3100_v27 = vmul.f32 %v6585_v26, %v4616_v25 }
 0xab4   :  { %v3105_v28 = vrot.slane %v3100_v27, %v6897_v33 }
 0xab6   :  { %v3107_v30 = vmul.f32 %v3105_v28, %v3010_v59  ;;  %v3108_v31 = vmul.f32 %v3105_v28, %v3011_v60  ;;  %v6461_v59 = vpack.c.bf16 %v4640_v56, %v4639_v55  ;;  %v4641_v60 = vld [vmem:[%s7720_s8 + $0x1a0] sm:$0xff] }
 0xab7   :  { %v6464_v62 = vpack.c.bf16 %v4642_v61, %v4641_v60  ;;  %v4660_v61 = vld [vmem:[%s7720_s8 + $0x1f0] sm:$0xff] }
 0xab8   :  { %v3115_v32 = vadd.f32 %v4620_v29, %v3107_v30  ;;  %v3116_v34 = vadd.f32 %v4620_v29, %v3108_v31 }
 0xaba   :  { %v7465_v36 = vadd.f32 %v3115_v32, %v7180_v3  ;;  %v7468_v37 = vadd.f32 %v3116_v34, %v7182_v4  ;;  %v4621_v3 = vld [vmem:[%s7720_s8 + $0x120] sm:$0xff]  ;;  %v4622_v4 = vld [vmem:[%s7720_s8 + $0x128] sm:$0xff] }
 0xabb   :  { %v6440_v42 = vpack.c.bf16 %v4622_v4, %v4621_v3 }
 0xabc   :  { %v3119_v39 = vmax.f32 %v7465_v36, 0.0  ;;  %v3120_v40 = vmax.f32 %v7468_v37, 0.0 }
 0xabe   :  { %3121 = vst.msk [vmem:[#allocation2 + $0x1] sm:$0x3f] %vm1762_vm9, %v3119_v39  ;;  %3122 = vst.msk [vmem:[#allocation2 + $0x9] sm:$0x3f] %vm1762_vm9, %v3120_v40 }
 0xac5   :  { %v3139_v45 = vld [vmem:[#allocation2 + $0x1] sm:$0x3f]  ;;  %v3140_v46 = vld [vmem:[#allocation2 + $0x9] sm:$0x3f] }
 0xac6   :  { %5762 = vmatmul.mubr.msk.f32.vlgmr.msra.gmra.mrb[32].mxu0 %vm1759_vm8, %v3139_v45  ;;  %5777 = vmatmul.mubr.msk.f32.vlgmr.msra.gmra.mrb[32].mxu1 %vm1759_vm8, %v3140_v46  ;;  %v3130_v57 = vld [vmem:[#allocation2] sm:$0x3f]  ;;  %v3131_v58 = vld [vmem:[#allocation2 + $0x8] sm:$0x3f] }
 0xac7   :  { %6441 = vmatpush3.bf16.msra.mxu0 %v6440_v42  ;;  %6450 = vmatpush3.bf16.msra.mxu1 %v6440_v42  ;;  %v3440_v63 = vld [vmem:[#allocation2 + $0x2] sm:$0x3f]  ;;  %v3441_v0 = vld [vmem:[#allocation2 + $0xa] sm:$0x3f] }
 0xac8   :  { %6442 = vmatprep.subr.bf16.mxu0 %v6617_v51  ;;  %6451 = vmatprep.subr.bf16.mxu1 %v6617_v51 }
 0xac9   :  { %5791 = vmatprep.mubr.msk.f32.mxu0 %vm6618_vm1, %v6619_v6  ;;  %5806 = vmatprep.mubr.msk.f32.mxu1 %vm6618_vm1, %v6619_v6 }
 0xacb   :  { %6444 = vmatpush3.bf16.msra.mxu0 %v6443_v47  ;;  %6453 = vmatpush3.bf16.msra.mxu1 %v6443_v47 }
 0xacc   :  { %6445 = vmatprep.subr.bf16.mxu0 %v6617_v51  ;;  %6454 = vmatprep.subr.bf16.mxu1 %v6617_v51 }
 0xacf   :  { %6447 = vmatpush3.bf16.msra.mxu0 %v6446_v50  ;;  %6456 = vmatpush3.bf16.msra.mxu1 %v6446_v50 }
 0xad0   :  { %6457 = vmatprep.subr.bf16.mxu0 %v6617_v51  ;;  %6466 = vmatprep.subr.bf16.mxu1 %v6617_v51 }
 0xad2   :  { %5792 = vmatmul.mubr.msk.f32.vlgmr.msra.gmra.mrb[34].mxu0 %vm1759_vm8, %v3130_v57  ;;  %5807 = vmatmul.mubr.msk.f32.vlgmr.msra.gmra.mrb[34].mxu1 %vm1759_vm8, %v3131_v58  ;;  %v4658_v58 = vld [vmem:[%s7720_s8 + $0x1e0] sm:$0xff] }
 0xad3   :  { %6459 = vmatpush3.bf16.msra.mxu0 %v6458_v54  ;;  %6468 = vmatpush3.bf16.msra.mxu1 %v6458_v54 }
 0xad4   :  { %6460 = vmatprep.subr.bf16.mxu0 %v6617_v51  ;;  %6469 = vmatprep.subr.bf16.mxu1 %v6617_v51 }
 0xad5   :  { %5821 = vmatprep.mubr.msk.f32.mxu0 %vm6618_vm1, %v6619_v6  ;;  %5836 = vmatprep.mubr.msk.f32.mxu1 %vm6618_vm1, %v6619_v6 }
 0xad7   :  { %6462 = vmatpush3.bf16.msra.mxu0 %v6461_v59  ;;  %6471 = vmatpush3.bf16.msra.mxu1 %v6461_v59  ;;  %v4659_v59 = vld [vmem:[%s7720_s8 + $0x1e8] sm:$0xff] }
 0xad8   :  { %6463 = vmatprep.subr.bf16.mxu0 %v6617_v51  ;;  %6472 = vmatprep.subr.bf16.mxu1 %v6617_v51  ;;  %v6494_v60 = vpack.c.bf16 %v4659_v59, %v4658_v58 }
 0xadb   :  { %6465 = vmatpush3.bf16.msra.mxu0 %v6464_v62  ;;  %6474 = vmatpush3.bf16.msra.mxu1 %v6464_v62  ;;  %v4661_v62 = vld [vmem:[%s7720_s8 + $0x1f8] sm:$0xff] }
 0xadc   :  { %6475 = vmatprep.subr.bf16.mxu0 %v6617_v51  ;;  %6484 = vmatprep.subr.bf16.mxu1 %v6617_v51 }
 0xade   :  { %5822 = vmatmul.mubr.msk.f32.vlgmr.msra.gmra.mrb[36].mxu0 %vm1759_vm8, %v3440_v63  ;;  %5837 = vmatmul.mubr.msk.f32.vlgmr.msra.gmra.mrb[36].mxu1 %vm1759_vm8, %v3441_v0  ;;  %v6497_v63 = vpack.c.bf16 %v4661_v62, %v4660_v61  ;;  %v4662_v0 = vld [vmem:[%s7720_s8 + $0x200] sm:$0xff] }
 0xadf   :  { %6477 = vmatpush3.bf16.msra.mxu0 %v7260_v35  ;;  %5851 = vmatprep.mubr.msk.f32.mxu0 %vm6618_vm1, %v6619_v6 }
 0xae0   :  { %6478 = vmatprep.subr.bf16.mxu0 %v6617_v51  ;;  %6486 = vmatpush3.bf16.msra.mxu1 %v7260_v35 }
 0xae1   :  { %6487 = vmatprep.subr.bf16.mxu1 %v6617_v51  ;;  %5866 = vmatprep.mubr.msk.f32.mxu1 %vm6618_vm1, %v6619_v6 }
 0xae3   :  { %6480 = vmatpush3.bf16.msra.mxu0 %v7272_v38 }
 0xae4   :  { %6481 = vmatprep.subr.bf16.mxu0 %v6617_v51  ;;  %6489 = vmatpush3.bf16.msra.mxu1 %v7272_v38 }
 0xae5   :  { %6490 = vmatprep.subr.bf16.mxu1 %v6617_v51 }
 0xae7   :  { %6483 = vmatpush3.bf16.msra.mxu0 %v7284_v41 }
 0xae8   :  { %6492 = vmatpush3.bf16.msra.mxu1 %v7284_v41  ;;  %6493 = vmatprep.subr.bf16.mxu0 %v6617_v51 }
 0xae9   :  { %6502 = vmatprep.subr.bf16.mxu1 %v6617_v51 }
 0xb99   :  { %v3210_v1 = vpop.f32.mrb[32].mxu0  ;;  %v3283_v2 = vpop.f32.mrb[32].mxu1 }
 0xb9a   :  { %v5763_v5 = vpop.f32.mrb[33].mxu0  ;;  %v5778_v7 = vpop.f32.mrb[33].mxu1 }
 0xba5   :  { %v3356_v8 = vpop.f32.mrb[34].mxu0  ;;  %v3429_v9 = vpop.f32.mrb[34].mxu1 }
 0xba6   :  { %v3357_v10 = vadd.f32 %v3356_v8, %v3210_v1  ;;  %v3430_v11 = vadd.f32 %v3429_v9, %v3283_v2  ;;  %v5793_v12 = vpop.f32.mrb[35].mxu0  ;;  %v5808_v13 = vpop.f32.mrb[35].mxu1  ;;  %v4663_v1 = vld [vmem:[%s7720_s8 + $0x208] sm:$0xff] }
 0xba7   :  { %v6500_v2 = vpack.c.bf16 %v4663_v1, %v4662_v0 }
 0xbb1   :  { %v3511_v14 = vpop.f32.mrb[36].mxu0  ;;  %v3584_v16 = vpop.f32.mrb[36].mxu1 }
 0xbb2   :  { %v3588_v17 = vadd.f32 %v3511_v14, %v3357_v10  ;;  %v3589_v18 = vadd.f32 %v3584_v16, %v3430_v11  ;;  %v5823_v19 = vpop.f32.mrb[37].mxu0  ;;  %v5838_v20 = vpop.f32.mrb[37].mxu1  ;;  %v4647_v10 = vld [vmem:[%s7722_s10 + $0x2] sm:$0x1] }
 0xbb3   :  { %v4651_v14 = vld [vmem:[%s7723_s11 + $0x2] ss:$0 sm:$0xff] }
 0xbb4   :  { %v3598_v21 = vadd.f32 %v4646_v15, %v3588_v17  ;;  %v3599_v22 = vadd.f32 %v4646_v15, %v3589_v18 }
 0xbb6   :  { %v3604_v23 = vsel %vm1762_vm9, %v3598_v21, 0.0  ;;  %v3605_v24 = vsel %vm1762_vm9, %v3599_v22, 0.0 }
 0xbb7   :  { %v3606_v25 = vadd.f32 %v3605_v24, %v3604_v23  ;;  %v4654_v24 = vld [vmem:[%s7720_s8 + $0x1c0] sm:$0xff] }
 0xbb9   :  { %v3607_v26 = vsel %vm1762_vm9, %v3606_v25, 0.0  ;;  %v4655_v25 = vld [vmem:[%s7720_s8 + $0x1c8] sm:$0xff] }
 0xbba   :  { %v3608_v27 = vrot.slane %v3607_v26, 4 }
 0xbbc   :  { %v3609_v28 = vadd.f32 %v3608_v27, %v3607_v26 }
 0xbbe   :  { %v3610_v29 = vrot.slane %v3609_v28, 2 }
 0xbc0   :  { %v3611_v30 = vadd.f32 %v3610_v29, %v3609_v28  ;;  %v6515_v28 = vpack.c.bf16 %v4655_v25, %v4654_v24  ;;  %v4656_v29 = vld [vmem:[%s7720_s8 + $0x1d0] sm:$0xff] }
 0xbc2   :  { %v3612_v31 = vrot.slane %v3611_v30, 1 }
 0xbc4   :  { %v3613_v32 = vadd.f32 %v3612_v31, %v3611_v30  ;;  %v4657_v30 = vld [vmem:[%s7720_s8 + $0x1d8] sm:$0xff] }
 0xbc5   :  { %v6518_v31 = vpack.c.bf16 %v4657_v30, %v4656_v29 }
 0xbc6   :  { %5852 = vmatmul.mubr.msk.f32.vlgmr.msra.gmra.mrb[38].mxu0 %vm1759_vm8, %v3613_v32  ;;  %v4668_v32 = vld [vmem:[%s7720_s8 + $0x210] sm:$0xff] }
 0xbc7   :  { %5881 = vmatprep.mubr.msk.f32.mxu0 %vm6618_vm1, %v6619_v6  ;;  %6495 = vmatpush3.bf16.msra.mxu0 %v6494_v60 }
 0xbc8   :  { %6496 = vmatprep.subr.bf16.mxu0 %v6617_v51 }
 0xbcb   :  { %6498 = vmatpush3.bf16.msra.mxu0 %v6497_v63 }
 0xbcc   :  { %6499 = vmatprep.subr.bf16.mxu0 %v6617_v51 }
 0xbcf   :  { %6501 = vmatpush3.bf16.msra.mxu0 %v6500_v2 }
 0xbd0   :  { %6511 = vmatprep.subr.bf16.mxu0 %v6617_v51 }
 0xc99   :  { %v3683_v34 = vpop.f32.mrb[38].mxu0 }
 0xc9a   :  { %v3687_v3 = vmul.f32 0.013888889, %v3683_v34  ;;  %v5853_v4 = vpop.f32.mrb[39].mxu0  ;;  %v4669_v34 = vld [vmem:[%s7720_s8 + $0x218] sm:$0xff] }
 0xc9b   :  { %v4670_v4 = vld [vmem:[%s7720_s8 + $0x220] sm:$0xff] }
 0xc9c   :  { %v3691_v42 = vrot.slane %v3687_v3, %v6897_v33  ;;  %v6530_v3 = vpack.c.bf16 %v4669_v34, %v4668_v32 }
 0xc9e   :  { %v3692_v43 = vsub.f32 %v3598_v21, %v3691_v42  ;;  %v3693_v44 = vsub.f32 %v3599_v22, %v3691_v42  ;;  %v4652_v21 = vld [vmem:[%s7720_s8 + $0x1b0] sm:$0xff]  ;;  %v4653_v22 = vld [vmem:[%s7720_s8 + $0x1b8] sm:$0xff]  ;;  %v4671_v42 = vld [vmem:[%s7720_s8 + $0x228] sm:$0xff] }
 0xc9f   :  { %v6512_v23 = vpack.c.bf16 %v4653_v22, %v4652_v21 }
 0xca0   :  { %v3694_v45 = vmul.f32 %v3692_v43, %v3692_v43  ;;  %v3695_v46 = vmul.f32 %v3693_v44, %v3693_v44 }
 0xca2   :  { %v3696_v47 = vsel %vm1762_vm9, %v3694_v45, 0.0  ;;  %v3697_v48 = vsel %vm1762_vm9, %v3695_v46, 0.0  ;;  %v6533_v45 = vpack.c.bf16 %v4671_v42, %v4670_v4  ;;  %v4672_v46 = vld [vmem:[%s7720_s8 + $0x230] sm:$0xff] }
 0xca3   :  { %v3698_v49 = vadd.f32 %v3697_v48, %v3696_v47  ;;  %v4673_v47 = vld [vmem:[%s7720_s8 + $0x238] sm:$0xff] }
 0xca4   :  { %v6536_v48 = vpack.c.bf16 %v4673_v47, %v4672_v46  ;;  %v4682_v47 = vld [vmem:[%s7723_s11 + $0x3] ss:$0 sm:$0xff] }
 0xca5   :  { %v3699_v50 = vsel %vm1762_vm9, %v3698_v49, 0.0 }
 0xca6   :  { %v3700_v52 = vrot.slane %v3699_v50, 4 }
 0xca8   :  { %v3701_v53 = vadd.f32 %v3700_v52, %v3699_v50 }
 0xcaa   :  { %v3702_v54 = vrot.slane %v3701_v53, 2 }
 0xcac   :  { %v3703_v55 = vadd.f32 %v3702_v54, %v3701_v53 }
 0xcae   :  { %v3704_v56 = vrot.slane %v3703_v55, 1 }
 0xcb0   :  { %v3705_v57 = vadd.f32 %v3704_v56, %v3703_v55 }
 0xcb2   :  { %5867 = vmatmul.mubr.msk.f32.vlgmr.msra.gmra.mrb[38].mxu1 %vm1759_vm8, %v3705_v57 }
 0xcb3   :  { %5896 = vmatprep.mubr.msk.f32.mxu1 %vm6618_vm1, %v6619_v6  ;;  %6504 = vmatpush3.bf16.msra.mxu1 %v6494_v60 }
 0xcb4   :  { %6505 = vmatprep.subr.bf16.mxu1 %v6617_v51 }
 0xcb7   :  { %6507 = vmatpush3.bf16.msra.mxu1 %v6497_v63 }
 0xcb8   :  { %6508 = vmatprep.subr.bf16.mxu1 %v6617_v51 }
 0xcbb   :  { %6510 = vmatpush3.bf16.msra.mxu1 %v6500_v2 }
 0xcbc   :  { %6520 = vmatprep.subr.bf16.mxu1 %v6617_v51 }
 0xd85   :  { %v3775_v5 = vpop.f32.mrb[38].mxu1 }
 0xd86   :  { %v3779_v7 = vmul.f32 0.013888889, %v3775_v5  ;;  %v5868_v8 = vpop.f32.mrb[39].mxu1 }
 0xd88   :  { %v3780_v9 = vadd.f32 1e-05, %v3779_v7 }
 0xd8a   :  { %6586 = vrsqrt.f32 %v3780_v9 }
 0xd94   :  { %v6587_v11 = vpop.eup %6586 }
 0xd95   :  { %v3782_v12 = vmul.f32 %v6587_v11, %v4647_v10 }
 0xd97   :  { %v3787_v13 = vrot.slane %v3782_v12, %v6897_v33 }
 0xd99   :  { %v3789_v15 = vmul.f32 %v3787_v13, %v3692_v43  ;;  %v3790_v16 = vmul.f32 %v3787_v13, %v3693_v44 }
 0xd9b   :  { %v3797_v17 = vadd.f32 %v4651_v14, %v3789_v15  ;;  %v3798_v18 = vadd.f32 %v4651_v14, %v3790_v16 }
 0xd9d   :  { %v3799_v19 = vmax.f32 %v3797_v17, 0.0  ;;  %v3800_v20 = vmax.f32 %v3798_v18, 0.0 }
 0xd9f   :  { %3801 = vst.msk [vmem:[#allocation2 + $0x1] sm:$0x3f] %vm1762_vm9, %v3799_v19  ;;  %3802 = vst.msk [vmem:[#allocation2 + $0x9] sm:$0x3f] %vm1762_vm9, %v3800_v20 }
 0xda6   :  { %v3819_v26 = vld [vmem:[#allocation2 + $0x1] sm:$0x3f]  ;;  %v3820_v27 = vld [vmem:[#allocation2 + $0x9] sm:$0x3f] }
 0xda7   :  { %5882 = vmatmul.mubr.msk.f32.vlgmr.msra.gmra.mrb[40].mxu0 %vm1759_vm8, %v3819_v26  ;;  %5897 = vmatmul.mubr.msk.f32.vlgmr.msra.gmra.mrb[40].mxu1 %vm1759_vm8, %v3820_v27  ;;  %v3810_v43 = vld [vmem:[#allocation2] sm:$0x3f]  ;;  %v3811_v44 = vld [vmem:[#allocation2 + $0x8] sm:$0x3f] }
 0xda8   :  { %6513 = vmatpush3.bf16.msra.mxu0 %v6512_v23  ;;  %6522 = vmatpush3.bf16.msra.mxu1 %v6512_v23  ;;  %v4120_v49 = vld [vmem:[#allocation2 + $0x2] sm:$0x3f]  ;;  %v4121_v50 = vld [vmem:[#allocation2 + $0xa] sm:$0x3f] }
 0xda9   :  { %6514 = vmatprep.subr.bf16.mxu0 %v6617_v51  ;;  %6523 = vmatprep.subr.bf16.mxu1 %v6617_v51 }
 0xdaa   :  { %5911 = vmatprep.mubr.msk.f32.mxu0 %vm6618_vm1, %v6619_v6  ;;  %5926 = vmatprep.mubr.msk.f32.mxu1 %vm6618_vm1, %v6619_v6 }
 0xdac   :  { %6516 = vmatpush3.bf16.msra.mxu0 %v6515_v28  ;;  %6525 = vmatpush3.bf16.msra.mxu1 %v6515_v28 }
 0xdad   :  { %6517 = vmatprep.subr.bf16.mxu0 %v6617_v51  ;;  %6526 = vmatprep.subr.bf16.mxu1 %v6617_v51 }
 0xdb0   :  { %6519 = vmatpush3.bf16.msra.mxu0 %v6518_v31  ;;  %6528 = vmatpush3.bf16.msra.mxu1 %v6518_v31 }
 0xdb1   :  { %6529 = vmatprep.subr.bf16.mxu0 %v6617_v51  ;;  %6538 = vmatprep.subr.bf16.mxu1 %v6617_v51 }
 0xdb3   :  { %5912 = vmatmul.mubr.msk.f32.vlgmr.msra.gmra.mrb[42].mxu0 %vm1759_vm8, %v3810_v43  ;;  %5927 = vmatmul.mubr.msk.f32.vlgmr.msra.gmra.mrb[42].mxu1 %vm1759_vm8, %v3811_v44  ;;  %v4678_v43 = vld [vmem:[%s7722_s10 + $0x3] sm:$0x1] }
 0xdb4   :  { %6531 = vmatpush3.bf16.msra.mxu0 %v6530_v3  ;;  %6540 = vmatpush3.bf16.msra.mxu1 %v6530_v3 }
 0xdb5   :  { %6532 = vmatprep.subr.bf16.mxu0 %v6617_v51  ;;  %6541 = vmatprep.subr.bf16.mxu1 %v6617_v51 }
 0xdb6   :  { %5941 = vmatprep.mubr.msk.f32.mxu0 %vm6618_vm1, %v6619_v6  ;;  %5956 = vmatprep.mubr.msk.f32.mxu1 %vm6618_vm1, %v6619_v6 }
 0xdb8   :  { %6534 = vmatpush3.bf16.msra.mxu0 %v6533_v45  ;;  %6543 = vmatpush3.bf16.msra.mxu1 %v6533_v45 }
 0xdb9   :  { %6535 = vmatprep.subr.bf16.mxu0 %v6617_v51  ;;  %6544 = vmatprep.subr.bf16.mxu1 %v6617_v51 }
 0xdbc   :  { %6537 = vmatpush3.bf16.msra.mxu0 %v6536_v48  ;;  %6546 = vmatpush3.bf16.msra.mxu1 %v6536_v48 }
 0xdbd   :  { %6547 = vmatprep.subr.bf16.mxu0 %v6617_v51  ;;  %6556 = vmatprep.subr.bf16.mxu1 %v6617_v51 }
 0xdbf   :  { %5942 = vmatmul.mubr.msk.f32.vlgmr.msra.gmra.mrb[44].mxu0 %vm1759_vm8, %v4120_v49  ;;  %5957 = vmatmul.mubr.msk.f32.vlgmr.msra.gmra.mrb[44].mxu1 %vm1759_vm8, %v4121_v50 }
 0xdc0   :  { %6549 = vmatpush3.bf16.msra.mxu0 %v7260_v35  ;;  %5971 = vmatprep.mubr.msk.f32.mxu0 %vm6618_vm1, %v6619_v6 }
 0xdc1   :  { %6550 = vmatprep.subr.bf16.mxu0 %v6617_v51  ;;  %6558 = vmatpush3.bf16.msra.mxu1 %v7260_v35 }
 0xdc2   :  { %6559 = vmatprep.subr.bf16.mxu1 %v6617_v51  ;;  %5986 = vmatprep.mubr.msk.f32.mxu1 %vm6618_vm1, %v6619_v6 }
 0xdc4   :  { %6552 = vmatpush3.bf16.msra.mxu0 %v7272_v38 }
 0xdc5   :  { %6553 = vmatprep.subr.bf16.mxu0 %v6617_v51  ;;  %6561 = vmatpush3.bf16.msra.mxu1 %v7272_v38  ;;  %v4677_v38 = vld [vmem:[%s7721_s9 + $0x3] ss:$0 sm:$0xff] }
 0xdc6   :  { %6562 = vmatprep.subr.bf16.mxu1 %v6617_v51 }
 0xdc8   :  { %6555 = vmatpush3.bf16.msra.mxu0 %v7284_v41 }
 0xdc9   :  { %6564 = vmatpush3.bf16.msra.mxu1 %v7284_v41 }
 0xe7a   :  { %v3890_v52 = vpop.f32.mrb[40].mxu0  ;;  %v3963_v53 = vpop.f32.mrb[40].mxu1 }
 0xe7b   :  { %v5883_v35 = vpop.f32.mrb[41].mxu0  ;;  %v5898_v54 = vpop.f32.mrb[41].mxu1 }
 0xe86   :  { %v4036_v55 = vpop.f32.mrb[42].mxu0  ;;  %v4109_v56 = vpop.f32.mrb[42].mxu1 }
 0xe87   :  { %v4037_v57 = vadd.f32 %v4036_v55, %v3890_v52  ;;  %v4110_v6 = vadd.f32 %v4109_v56, %v3963_v53  ;;  %v5913_v58 = vpop.f32.mrb[43].mxu0  ;;  %v5928_v59 = vpop.f32.mrb[43].mxu1 }
 0xe92   :  { %v4191_v60 = vpop.f32.mrb[44].mxu0  ;;  %v4264_v51 = vpop.f32.mrb[44].mxu1 }
 0xe93   :  { %v4268_v61 = vadd.f32 %v4191_v60, %v4037_v57  ;;  %v4269_v62 = vadd.f32 %v4264_v51, %v4110_v6  ;;  %v5943_v63 = vpop.f32.mrb[45].mxu0  ;;  %v5958_v41 = vpop.f32.mrb[45].mxu1 }
 0xe95   :  { %v4278_v0 = vadd.f32 %v4677_v38, %v4268_v61  ;;  %v4279_v1 = vadd.f32 %v4677_v38, %v4269_v62 }
 0xe97   :  { %v4284_v2 = vsel %vm1762_vm9, %v4278_v0, 0.0  ;;  %v4285_v5 = vsel %vm1762_vm9, %v4279_v1, 0.0 }
 0xe98   :  { %v4286_v7 = vadd.f32 %v4285_v5, %v4284_v2 }
 0xe9a   :  { %v4287_v8 = vsel %vm1762_vm9, %v4286_v7, 0.0 }
 0xe9b   :  { %v4288_v9 = vrot.slane %v4287_v8, 4 }
 0xe9d   :  { %v4289_v10 = vadd.f32 %v4288_v9, %v4287_v8 }
 0xe9f   :  { %v4290_v11 = vrot.slane %v4289_v10, 2 }
 0xea1   :  { %v4291_v12 = vadd.f32 %v4290_v11, %v4289_v10 }
 0xea3   :  { %v4292_v13 = vrot.slane %v4291_v12, 1 }
 0xea5   :  { %v4293_v14 = vadd.f32 %v4292_v13, %v4291_v12 }
 0xea7   :  { %5972 = vmatmul.mubr.msk.f32.vlgmr.msra.gmra.mrb[46].mxu0 %vm1759_vm8, %v4293_v14 }
 0xf7a   :  { %v4363_v15 = vpop.f32.mrb[46].mxu0 }
 0xf7b   :  { %v4367_v16 = vmul.f32 0.013888889, %v4363_v15  ;;  %v5973_v17 = vpop.f32.mrb[47].mxu0 }
 0xf7d   :  { %v4371_v18 = vrot.slane %v4367_v16, %v6897_v33 }
 0xf7f   :  { %v4372_v19 = vsub.f32 %v4278_v0, %v4371_v18  ;;  %v4373_v20 = vsub.f32 %v4279_v1, %v4371_v18 }
 0xf81   :  { %v4374_v21 = vmul.f32 %v4372_v19, %v4372_v19  ;;  %v4375_v22 = vmul.f32 %v4373_v20, %v4373_v20 }
 0xf83   :  { %v4376_v23 = vsel %vm1762_vm9, %v4374_v21, 0.0  ;;  %v4377_v24 = vsel %vm1762_vm9, %v4375_v22, 0.0 }
 0xf84   :  { %v4378_v25 = vadd.f32 %v4377_v24, %v4376_v23 }
 0xf86   :  { %v4379_v26 = vsel %vm1762_vm9, %v4378_v25, 0.0 }
 0xf87   :  { %v4380_v27 = vrot.slane %v4379_v26, 4 }
 0xf89   :  { %v4381_v28 = vadd.f32 %v4380_v27, %v4379_v26 }
 0xf8b   :  { %v4382_v29 = vrot.slane %v4381_v28, 2 }
 0xf8d   :  { %v4383_v30 = vadd.f32 %v4382_v29, %v4381_v28 }
 0xf8f   :  { %v4384_v31 = vrot.slane %v4383_v30, 1 }
 0xf91   :  { %v4385_v32 = vadd.f32 %v4384_v31, %v4383_v30 }
 0xf93   :  { %5987 = vmatmul.mubr.msk.f32.vlgmr.msra.gmra.mrb[46].mxu1 %vm1759_vm8, %v4385_v32 }
0x1066   :  { %v4455_v34 = vpop.f32.mrb[46].mxu1 }
0x1067   :  { %v4459_v3 = vmul.f32 0.013888889, %v4455_v34  ;;  %v5988_v4 = vpop.f32.mrb[47].mxu1 }
0x1069   :  { %v4460_v42 = vadd.f32 1e-05, %v4459_v3 }
0x106b   :  { %6588 = vrsqrt.f32 %v4460_v42 }
0x1075   :  { %v6589_v44 = vpop.eup %6588 }
0x1076   :  { %v4462_v45 = vmul.f32 %v6589_v44, %v4678_v43 }
0x1078   :  { %v4467_v46 = vrot.slane %v4462_v45, %v6897_v33 }
0x107a   :  { %v4469_v48 = vmul.f32 %v4467_v46, %v4372_v19  ;;  %v4470_v49 = vmul.f32 %v4467_v46, %v4373_v20 }
0x107c   :  { %v4477_v50 = vadd.f32 %v4682_v47, %v4469_v48  ;;  %v4478_v52 = vadd.f32 %v4682_v47, %v4470_v49 }
0x107e   :  { %v4479_v53 = vadd.f32 %v4477_v50, %v3119_v39  ;;  %v4480_v35 = vadd.f32 %v4478_v52, %v3120_v40 }
0x1080   :  { %v4481_v54 = vmax.f32 %v4479_v53, 0.0  ;;  %v4482_v55 = vmax.f32 %v4480_v35, 0.0 }
0x1082   :  { %4483 = vst.msk [vmem:[%s7725_s13] sm:$0x3f] %vm1762_vm9, %v4481_v54  ;;  %4484 = vst.msk [vmem:[%s7725_s13 + $0x8] sm:$0x3f] %vm1762_vm9, %v4482_v55 }
0x1083   :  { %4489 = vsyncpa [#allocation4], 1 }

</bundles_post_ra>
